<compile_context>
chip_gen: v7x
topology: tpu7x:2x2x1
jax: 0.10.0
libtpu: 0.0.40
codegen_flags: <defaults>
</compile_context>

<pallas_src>
import functools
import math

import jax
import jax.numpy as jnp
from jax.experimental import pallas as pl
from jax.experimental.pallas import tpu as pltpu

LN_EPS = 1e-5


def _layer_norm(x, gamma, beta):
    # x: (R, D); gamma/beta: (1, D); all f32.
    mu = jnp.mean(x, axis=-1, keepdims=True)
    var = jnp.mean((x - mu) ** 2, axis=-1, keepdims=True)
    return (x - mu) * jax.lax.rsqrt(var + LN_EPS) * gamma + beta


def _fused_encoder_kernel(x_ref, wqkv_ref, bqkv_ref, wo_ref, w1_ref, b1_ref,
                          w2_ref, vecs_ref, fg_ref, fb_ref, *out_and_scratch,
                          nhead, use_final_norm, emit_attn, compute_dtype):
    if emit_attn:
        out_ref, attn_ref, x_sc, ao_sc = out_and_scratch
    else:
        out_ref, x_sc, ao_sc = out_and_scratch
        attn_ref = None

    l = pl.program_id(1)                   # layer index (inner, "arbitrary")
    Bt, S, D = out_ref.shape
    dh = D // nhead
    scale = 1.0 / math.sqrt(dh)

    # Load the activation block once (at the first layer) into a VMEM scratch
    # that stays resident across all layer iterations.
    @pl.when(l == 0)
    def _():
        x_sc[...] = x_ref[...].reshape(Bt * S, D)

    x = x_sc[...]                           # (Bt*S, D) f32, layer-resident

    # ---- fused QKV projection (one MXU matmul, bf16 operands, f32 acc) ----
    qkv = jnp.dot(x.astype(compute_dtype), wqkv_ref[0],
                  preferred_element_type=jnp.float32) + bqkv_ref[0]  # (Bt*S, 3D)
    q = qkv[:, 0 * D:1 * D].reshape(Bt, S, D)
    k = qkv[:, 1 * D:2 * D].reshape(Bt, S, D)
    v = qkv[:, 2 * D:3 * D].reshape(Bt, S, D)

    # ---- multi-head attention: static head loop, batched over Bt ----
    if emit_attn:
        attn_acc = jnp.zeros((Bt, S, S), jnp.float32)
    for h in range(nhead):
        qh = q[:, :, h * dh:(h + 1) * dh]
        kh = k[:, :, h * dh:(h + 1) * dh]
        vh = v[:, :, h * dh:(h + 1) * dh]
        s = jnp.einsum('bqd,bkd->bqk', qh, kh,
                       preferred_element_type=jnp.float32) * scale
        s = s - jnp.max(s, axis=-1, keepdims=True)
        e = jnp.exp(s)
        p = e * pl.reciprocal(jnp.sum(e, axis=-1, keepdims=True), approx=True)
        if emit_attn:
            attn_acc = attn_acc + p
        oh = jnp.einsum('bqk,bkd->bqd', p, vh,
                        preferred_element_type=jnp.float32)
        ao_sc[:, :, h * dh:(h + 1) * dh] = oh      # static column offsets

    if emit_attn:
        attn_ref[0] = attn_acc * (1.0 / nhead)     # head-averaged weights

    # ---- packed per-layer vectors: [bo, b2, g1, be1, g2, be2, pad, pad] ----
    vecs = vecs_ref[0]                              # (8, D)
    bo, b2 = vecs[0:1, :], vecs[1:2, :]
    g1, be1 = vecs[2:3, :], vecs[3:4, :]
    g2, be2 = vecs[4:5, :], vecs[5:6, :]

    attn_out = ao_sc[...].reshape(Bt * S, D)
    proj = jnp.dot(attn_out.astype(compute_dtype), wo_ref[0],
                   preferred_element_type=jnp.float32) + bo
    y = _layer_norm(x + proj, g1, be1)              # residual + LN1

    h1 = jnp.maximum(
        jnp.dot(y.astype(compute_dtype), w1_ref[0],
                preferred_element_type=jnp.float32) + b1_ref[0], 0.0)
    ff = jnp.dot(h1.astype(compute_dtype), w2_ref[0],
                 preferred_element_type=jnp.float32) + b2
    x_new = _layer_norm(y + ff, g2, be2)            # residual + LN2
    x_sc[...] = x_new                               # carry to next layer

    # ---- final layer: (optional) final LayerNorm, write output block ----
    @pl.when(l == pl.num_programs(1) - 1)
    def _():
        out = x_new
        if use_final_norm:
            out = _layer_norm(out, fg_ref[...], fb_ref[...])
        out_ref[...] = out.reshape(Bt, S, D)


def transformer_encoder(src, layer_params, final_norm_params=None, nhead=4,
                        return_attn_weights=False, batch_block=None,
                        compute_dtype=jnp.bfloat16):
    """Pallas equivalent of TransformerEncoder.forward (mask=None path)."""
    B, S, D = src.shape
    L = len(layer_params)
    Fdim = layer_params[0]["w1"].shape[1]
    Bt = B if batch_block is None else batch_block
    assert B % Bt == 0, "batch_block must divide batch"
    assert D % nhead == 0

    def stack(name):
        return jnp.stack([jnp.asarray(p[name], jnp.float32) for p in layer_params])

    # Stack per-layer weights across the layer axis; pack small vectors.
    wqkv = jnp.concatenate([stack("wq"), stack("wk"), stack("wv")],
                           axis=-1).astype(compute_dtype)            # (L, D, 3D)
    bqkv = jnp.concatenate([stack("bq"), stack("bk"), stack("bv")],
                           axis=-1)[:, None, :]                      # (L, 1, 3D)
    wo = stack("wo").astype(compute_dtype)                           # (L, D, D)
    w1 = stack("w1").astype(compute_dtype)                           # (L, D, F)
    b1 = stack("b1")[:, None, :]                                     # (L, 1, F)
    w2 = stack("w2").astype(compute_dtype)                           # (L, F, D)
    zeros_d = jnp.zeros((L, D), jnp.float32)
    vecs = jnp.stack([stack("bo"), stack("b2"), stack("g1"), stack("be1"),
                      stack("g2"), stack("be2"), zeros_d, zeros_d],
                     axis=1)                                         # (L, 8, D)

    use_final_norm = final_norm_params is not None
    if use_final_norm:
        fg = jnp.asarray(final_norm_params[0], jnp.float32).reshape(1, D)
        fb = jnp.asarray(final_norm_params[1], jnp.float32).reshape(1, D)
    else:
        fg = jnp.ones((1, D), jnp.float32)
        fb = jnp.zeros((1, D), jnp.float32)

    grid = (B // Bt, L)
    lmap = lambda b, l: (l, 0, 0)
    in_specs = [
        pl.BlockSpec((Bt, S, D), lambda b, l: (b, 0, 0)),   # activations
        pl.BlockSpec((1, D, 3 * D), lmap),                  # wqkv
        pl.BlockSpec((1, 1, 3 * D), lmap),                  # bqkv
        pl.BlockSpec((1, D, D), lmap),                      # wo
        pl.BlockSpec((1, D, Fdim), lmap),                   # w1
        pl.BlockSpec((1, 1, Fdim), lmap),                   # b1
        pl.BlockSpec((1, Fdim, D), lmap),                   # w2
        pl.BlockSpec((1, 8, D), lmap),                      # packed vectors
        pl.BlockSpec((1, D), lambda b, l: (0, 0)),          # final gamma
        pl.BlockSpec((1, D), lambda b, l: (0, 0)),          # final beta
    ]
    if return_attn_weights:
        out_shape = (jax.ShapeDtypeStruct((B, S, D), jnp.float32),
                     jax.ShapeDtypeStruct((L, B, S, S), jnp.float32))
        out_specs = (pl.BlockSpec((Bt, S, D), lambda b, l: (b, 0, 0)),
                     pl.BlockSpec((1, Bt, S, S), lambda b, l: (l, b, 0, 0)))
    else:
        out_shape = jax.ShapeDtypeStruct((B, S, D), jnp.float32)
        out_specs = pl.BlockSpec((Bt, S, D), lambda b, l: (b, 0, 0))

    kernel = functools.partial(
        _fused_encoder_kernel, nhead=nhead, use_final_norm=use_final_norm,
        emit_attn=return_attn_weights, compute_dtype=compute_dtype)

    result = pl.pallas_call(
        kernel,
        grid=grid,
        in_specs=in_specs,
        out_specs=out_specs,
        out_shape=out_shape,
        scratch_shapes=[pltpu.VMEM((Bt * S, D), jnp.float32),   # resident acts
                        pltpu.VMEM((Bt, S, D), jnp.float32)],   # head outputs
        compiler_params=pltpu.CompilerParams(
            dimension_semantics=("parallel", "arbitrary")),
    )(src.astype(jnp.float32), wqkv, bqkv, wo, w1, b1, w2, vecs, fg, fb)

    if return_attn_weights:
        out, attn = result
        return out, attn                       # attn: (num_layers, B, S, S)
    return result


def init_layer_params(key, d_model, dim_ff):
    keys = jax.random.split(key, 6)
    s = 1.0 / math.sqrt(d_model)
    return {
        "wq": jax.random.normal(keys[0], (d_model, d_model), jnp.float32) * s,
        "wk": jax.random.normal(keys[1], (d_model, d_model), jnp.float32) * s,
        "wv": jax.random.normal(keys[2], (d_model, d_model), jnp.float32) * s,
        "bq": jnp.zeros((d_model,), jnp.float32),
        "bk": jnp.zeros((d_model,), jnp.float32),
        "bv": jnp.zeros((d_model,), jnp.float32),
        "wo": jax.random.normal(keys[3], (d_model, d_model), jnp.float32) * s,
        "bo": jnp.zeros((d_model,), jnp.float32),
        "w1": jax.random.normal(keys[4], (d_model, dim_ff), jnp.float32) * s,
        "b1": jnp.zeros((dim_ff,), jnp.float32),
        "w2": jax.random.normal(keys[5], (dim_ff, d_model), jnp.float32)
              * (1.0 / math.sqrt(dim_ff)),
        "b2": jnp.zeros((d_model,), jnp.float32),
        "g1": jnp.ones((d_model,), jnp.float32),
        "be1": jnp.zeros((d_model,), jnp.float32),
        "g2": jnp.ones((d_model,), jnp.float32),
        "be2": jnp.zeros((d_model,), jnp.float32),
    }


if __name__ == "__main__":
    B, S, D = 2, 8, 32
    NHEAD, DIM_FF, NUM_LAYERS = 4, 64, 2

    root = jax.random.PRNGKey(0)
    k_x, *k_layers = jax.random.split(root, 1 + NUM_LAYERS)
    src = jax.random.normal(k_x, (B, S, D), jnp.float32)

    layer_params = [init_layer_params(k, D, DIM_FF) for k in k_layers]
    final_norm = (jnp.ones((D,), jnp.float32), jnp.zeros((D,), jnp.float32))

    # Variant 1: with attention weights + final LayerNorm (bf16 matmuls).
    out, attn = transformer_encoder(src, layer_params,
                                    final_norm_params=final_norm,
                                    nhead=NHEAD, return_attn_weights=True)
    jax.block_until_ready(out)
    jax.block_until_ready(attn)
    assert out.shape == (B, S, D)
    assert attn.shape == (NUM_LAYERS, B, S, S)
    assert bool(jnp.all(jnp.isfinite(out)))
    assert bool(jnp.all(jnp.isfinite(attn)))

    # Variant 2: no attention weights, no final norm, f32 matmuls.
    out2 = transformer_encoder(src, layer_params, final_norm_params=None,
                               nhead=NHEAD, return_attn_weights=False,
                               compute_dtype=jnp.float32)
    jax.block_until_ready(out2)
    assert out2.shape == (B, S, D)
    assert bool(jnp.all(jnp.isfinite(out2)))

    print("KERNEL_OK")
</pallas_src>

<mosaic_0001>
module attributes {stable_mosaic.version = 11 : i64} {
  func.func @_fused_encoder_kernel(%arg0: i32, %arg1: i32, %arg2: memref<2x8x32xf32, #tpu.memory_space<vmem>>, %arg3: memref<1x32x96xbf16, #tpu.memory_space<vmem>>, %arg4: memref<1x1x96xf32, #tpu.memory_space<vmem>>, %arg5: memref<1x32x32xbf16, #tpu.memory_space<vmem>>, %arg6: memref<1x32x64xbf16, #tpu.memory_space<vmem>>, %arg7: memref<1x1x64xf32, #tpu.memory_space<vmem>>, %arg8: memref<1x64x32xbf16, #tpu.memory_space<vmem>>, %arg9: memref<1x8x32xf32, #tpu.memory_space<vmem>>, %arg10: memref<1x32xf32, #tpu.memory_space<vmem>>, %arg11: memref<1x32xf32, #tpu.memory_space<vmem>>, %arg12: memref<2x8x32xf32, #tpu.memory_space<vmem>>, %arg13: memref<1x2x8x8xf32, #tpu.memory_space<vmem>>, %arg14: memref<16x32xf32, #tpu.memory_space<vmem>>, %arg15: memref<2x8x32xf32, #tpu.memory_space<vmem>>) attributes {dimension_semantics = [#tpu.dimension_semantics<parallel>, #tpu.dimension_semantics<arbitrary>], iteration_bounds = array<i64: 1, 2>, scalar_prefetch = 0 : i64, scratch_operands = 2 : i64, tpu.core_type = #tpu.core_type<tc>, window_params = [{transform_indices = @transform_0, window_bounds = array<i64: 2, 8, 32>}, {transform_indices = @transform_1, window_bounds = array<i64: 1, 32, 96>}, {transform_indices = @transform_2, window_bounds = array<i64: 1, 1, 96>}, {transform_indices = @transform_3, window_bounds = array<i64: 1, 32, 32>}, {transform_indices = @transform_4, window_bounds = array<i64: 1, 32, 64>}, {transform_indices = @transform_5, window_bounds = array<i64: 1, 1, 64>}, {transform_indices = @transform_6, window_bounds = array<i64: 1, 64, 32>}, {transform_indices = @transform_7, window_bounds = array<i64: 1, 8, 32>}, {pipeline_mode = #tpu.pipeline_mode<synchronous>, transform_indices = @transform_8, window_bounds = array<i64: 1, 32>}, {pipeline_mode = #tpu.pipeline_mode<synchronous>, transform_indices = @transform_9, window_bounds = array<i64: 1, 32>}, {transform_indices = @transform_10, window_bounds = array<i64: 2, 8, 32>}, {transform_indices = @transform_11, window_bounds = array<i64: 1, 2, 8, 8>}]} {
    %c0_i32 = arith.constant 0 : i32
    %0 = arith.cmpi eq, %arg1, %c0_i32 : i32
    %1 = arith.extui %0 : i1 to i32
    %c0_i32_0 = arith.constant 0 : i32
    %2 = arith.cmpi ne, %1, %c0_i32_0 : i32
    scf.if %2 {
      %c0_78 = arith.constant 0 : index
      %c0_79 = arith.constant 0 : index
      %c0_80 = arith.constant 0 : index
      %182 = vector.load %arg2[%c0_78, %c0_79, %c0_80] : memref<2x8x32xf32, #tpu.memory_space<vmem>>, vector<2x8x32xf32>
      %183 = vector.shape_cast %182 : vector<2x8x32xf32> to vector<16x32xf32>
      %c0_81 = arith.constant 0 : index
      %c0_82 = arith.constant 0 : index
      %184 = vector.load %arg14[%c0_81, %c0_82] : memref<16x32xf32, #tpu.memory_space<vmem>>, vector<16x32xf32>
      tpu.vector_store %arg14[%c0_81, %c0_82], %183 {strides = array<i32>} : memref<16x32xf32, #tpu.memory_space<vmem>>, vector<16x32xf32>,
    } else {
    }
    %c0 = arith.constant 0 : index
    %c0_1 = arith.constant 0 : index
    %3 = vector.load %arg14[%c0, %c0_1] : memref<16x32xf32, #tpu.memory_space<vmem>>, vector<16x32xf32>
    %4 = arith.truncf %3 : vector<16x32xf32> to vector<16x32xbf16>
    %c0_2 = arith.constant 0 : index
    %c0_3 = arith.constant 0 : index
    %c0_4 = arith.constant 0 : index
    %5 = vector.load %arg3[%c0_2, %c0_3, %c0_4] : memref<1x32x96xbf16, #tpu.memory_space<vmem>>, vector<1x32x96xbf16>
    %6 = vector.shape_cast %5 : vector<1x32x96xbf16> to vector<32x96xbf16>
    %cst = arith.constant dense<0.000000e+00> : vector<16x96xf32>
    %7 = tpu.matmul %4, %6, %cst {dimension_numbers = #tpu.dot_dimension_numbers<[1], [0], [0], [1], [0, 0, 1, 1], [], []>} : vector<16x32xbf16>, vector<32x96xbf16>, vector<16x96xf32> -> vector<16x96xf32>
    %c0_5 = arith.constant 0 : index
    %c0_6 = arith.constant 0 : index
    %c0_7 = arith.constant 0 : index
    %8 = vector.load %arg4[%c0_5, %c0_6, %c0_7] : memref<1x1x96xf32, #tpu.memory_space<vmem>>, vector<1x1x96xf32>
    %9 = vector.shape_cast %8 : vector<1x1x96xf32> to vector<1x96xf32>
    %10 = vector.broadcast %9 : vector<1x96xf32> to vector<16x96xf32>
    %11 = arith.addf %7, %10 : vector<16x96xf32>
    %12 = vector.extract_strided_slice %11 {offsets = [0, 0], sizes = [16, 32], strides = [1, 1]} : vector<16x96xf32> to vector<16x32xf32>
    %13 = vector.shape_cast %12 : vector<16x32xf32> to vector<2x8x32xf32>
    %14 = vector.extract_strided_slice %11 {offsets = [0, 32], sizes = [16, 32], strides = [1, 1]} : vector<16x96xf32> to vector<16x32xf32>
    %15 = vector.shape_cast %14 : vector<16x32xf32> to vector<2x8x32xf32>
    %16 = vector.extract_strided_slice %11 {offsets = [0, 64], sizes = [16, 32], strides = [1, 1]} : vector<16x96xf32> to vector<16x32xf32>
    %17 = vector.shape_cast %16 : vector<16x32xf32> to vector<2x8x32xf32>
    %cst_8 = arith.constant 0.000000e+00 : f32
    %18 = vector.broadcast %cst_8 : f32 to vector<2x8x8xf32>
    %19 = vector.extract_strided_slice %13 {offsets = [0, 0, 0], sizes = [2, 8, 8], strides = [1, 1, 1]} : vector<2x8x32xf32> to vector<2x8x8xf32>
    %20 = vector.extract_strided_slice %15 {offsets = [0, 0, 0], sizes = [2, 8, 8], strides = [1, 1, 1]} : vector<2x8x32xf32> to vector<2x8x8xf32>
    %21 = vector.extract_strided_slice %17 {offsets = [0, 0, 0], sizes = [2, 8, 8], strides = [1, 1, 1]} : vector<2x8x32xf32> to vector<2x8x8xf32>
    "tpu.trace_start"() <{level = 10 : i32, message = "bqd,bkd->bqk"}> : () -> ()
    %cst_9 = arith.constant dense<0.000000e+00> : vector<2x8x8xf32>
    %22 = tpu.matmul %19, %20, %cst_9 {dimension_numbers = #tpu.dot_dimension_numbers<[2], [2], [1], [1], [0, 0, 0, 1, 1, 1], [0], [0]>} : vector<2x8x8xf32>, vector<2x8x8xf32>, vector<2x8x8xf32> -> vector<2x8x8xf32>
    "tpu.trace_stop"() : () -> ()
    %cst_10 = arith.constant 0.353553385 : f32
    %23 = vector.broadcast %cst_10 : f32 to vector<2x8x8xf32>
    %24 = arith.mulf %22, %23 : vector<2x8x8xf32>
    %cst_11 = arith.constant dense<0xFF800000> : vector<2x8xf32>
    %25 = vector.multi_reduction <maximumf>, %24, %cst_11 [2] : vector<2x8x8xf32> to vector<2x8xf32>
    %26 = vector.shape_cast %25 : vector<2x8xf32> to vector<2x8x1xf32>
    %27 = vector.broadcast %26 : vector<2x8x1xf32> to vector<2x8x8xf32>
    %28 = arith.subf %24, %27 : vector<2x8x8xf32>
    %29 = math.exp %28 : vector<2x8x8xf32>
    %cst_12 = arith.constant dense<0.000000e+00> : vector<2x8xf32>
    %30 = vector.multi_reduction <add>, %29, %cst_12 [2] : vector<2x8x8xf32> to vector<2x8xf32>
    %31 = vector.shape_cast %30 : vector<2x8xf32> to vector<2x8x1xf32>
    %32 = tpu.reciprocal %31 {approx = true} : vector<2x8x1xf32> -> vector<2x8x1xf32>
    %33 = vector.broadcast %32 : vector<2x8x1xf32> to vector<2x8x8xf32>
    %34 = arith.mulf %29, %33 : vector<2x8x8xf32>
    %35 = arith.addf %18, %34 : vector<2x8x8xf32>
    "tpu.trace_start"() <{level = 10 : i32, message = "bqk,bkd->bqd"}> : () -> ()
    %cst_13 = arith.constant dense<0.000000e+00> : vector<2x8x8xf32>
    %36 = tpu.matmul %34, %21, %cst_13 {dimension_numbers = #tpu.dot_dimension_numbers<[2], [1], [1], [2], [0, 0, 0, 1, 1, 2], [0], [0]>} : vector<2x8x8xf32>, vector<2x8x8xf32>, vector<2x8x8xf32> -> vector<2x8x8xf32>
    "tpu.trace_stop"() : () -> ()
    %c0_14 = arith.constant 0 : index
    %c0_15 = arith.constant 0 : index
    %c0_16 = arith.constant 0 : index
    %37 = vector.load %arg15[%c0_14, %c0_15, %c0_16] : memref<2x8x32xf32, #tpu.memory_space<vmem>>, vector<2x8x8xf32>
    tpu.vector_store %arg15[%c0_14, %c0_15, %c0_16], %36 {strides = array<i32>} : memref<2x8x32xf32, #tpu.memory_space<vmem>>, vector<2x8x8xf32>,
    %38 = vector.extract_strided_slice %13 {offsets = [0, 0, 8], sizes = [2, 8, 8], strides = [1, 1, 1]} : vector<2x8x32xf32> to vector<2x8x8xf32>
    %39 = vector.extract_strided_slice %15 {offsets = [0, 0, 8], sizes = [2, 8, 8], strides = [1, 1, 1]} : vector<2x8x32xf32> to vector<2x8x8xf32>
    %40 = vector.extract_strided_slice %17 {offsets = [0, 0, 8], sizes = [2, 8, 8], strides = [1, 1, 1]} : vector<2x8x32xf32> to vector<2x8x8xf32>
    "tpu.trace_start"() <{level = 10 : i32, message = "bqd,bkd->bqk"}> : () -> ()
    %cst_17 = arith.constant dense<0.000000e+00> : vector<2x8x8xf32>
    %41 = tpu.matmul %38, %39, %cst_17 {dimension_numbers = #tpu.dot_dimension_numbers<[2], [2], [1], [1], [0, 0, 0, 1, 1, 1], [0], [0]>} : vector<2x8x8xf32>, vector<2x8x8xf32>, vector<2x8x8xf32> -> vector<2x8x8xf32>
    "tpu.trace_stop"() : () -> ()
    %cst_18 = arith.constant 0.353553385 : f32
    %42 = vector.broadcast %cst_18 : f32 to vector<2x8x8xf32>
    %43 = arith.mulf %41, %42 : vector<2x8x8xf32>
    %cst_19 = arith.constant dense<0xFF800000> : vector<2x8xf32>
    %44 = vector.multi_reduction <maximumf>, %43, %cst_19 [2] : vector<2x8x8xf32> to vector<2x8xf32>
    %45 = vector.shape_cast %44 : vector<2x8xf32> to vector<2x8x1xf32>
    %46 = vector.broadcast %45 : vector<2x8x1xf32> to vector<2x8x8xf32>
    %47 = arith.subf %43, %46 : vector<2x8x8xf32>
    %48 = math.exp %47 : vector<2x8x8xf32>
    %cst_20 = arith.constant dense<0.000000e+00> : vector<2x8xf32>
    %49 = vector.multi_reduction <add>, %48, %cst_20 [2] : vector<2x8x8xf32> to vector<2x8xf32>
    %50 = vector.shape_cast %49 : vector<2x8xf32> to vector<2x8x1xf32>
    %51 = tpu.reciprocal %50 {approx = true} : vector<2x8x1xf32> -> vector<2x8x1xf32>
    %52 = vector.broadcast %51 : vector<2x8x1xf32> to vector<2x8x8xf32>
    %53 = arith.mulf %48, %52 : vector<2x8x8xf32>
    %54 = arith.addf %35, %53 : vector<2x8x8xf32>
    "tpu.trace_start"() <{level = 10 : i32, message = "bqk,bkd->bqd"}> : () -> ()
    %cst_21 = arith.constant dense<0.000000e+00> : vector<2x8x8xf32>
    %55 = tpu.matmul %53, %40, %cst_21 {dimension_numbers = #tpu.dot_dimension_numbers<[2], [1], [1], [2], [0, 0, 0, 1, 1, 2], [0], [0]>} : vector<2x8x8xf32>, vector<2x8x8xf32>, vector<2x8x8xf32> -> vector<2x8x8xf32>
    "tpu.trace_stop"() : () -> ()
    %c0_22 = arith.constant 0 : index
    %c0_23 = arith.constant 0 : index
    %c8 = arith.constant 8 : index
    %56 = vector.load %arg15[%c0_22, %c0_23, %c8] : memref<2x8x32xf32, #tpu.memory_space<vmem>>, vector<2x8x8xf32>
    tpu.vector_store %arg15[%c0_22, %c0_23, %c8], %55 {strides = array<i32>} : memref<2x8x32xf32, #tpu.memory_space<vmem>>, vector<2x8x8xf32>,
    %57 = vector.extract_strided_slice %13 {offsets = [0, 0, 16], sizes = [2, 8, 8], strides = [1, 1, 1]} : vector<2x8x32xf32> to vector<2x8x8xf32>
    %58 = vector.extract_strided_slice %15 {offsets = [0, 0, 16], sizes = [2, 8, 8], strides = [1, 1, 1]} : vector<2x8x32xf32> to vector<2x8x8xf32>
    %59 = vector.extract_strided_slice %17 {offsets = [0, 0, 16], sizes = [2, 8, 8], strides = [1, 1, 1]} : vector<2x8x32xf32> to vector<2x8x8xf32>
    "tpu.trace_start"() <{level = 10 : i32, message = "bqd,bkd->bqk"}> : () -> ()
    %cst_24 = arith.constant dense<0.000000e+00> : vector<2x8x8xf32>
    %60 = tpu.matmul %57, %58, %cst_24 {dimension_numbers = #tpu.dot_dimension_numbers<[2], [2], [1], [1], [0, 0, 0, 1, 1, 1], [0], [0]>} : vector<2x8x8xf32>, vector<2x8x8xf32>, vector<2x8x8xf32> -> vector<2x8x8xf32>
    "tpu.trace_stop"() : () -> ()
    %cst_25 = arith.constant 0.353553385 : f32
    %61 = vector.broadcast %cst_25 : f32 to vector<2x8x8xf32>
    %62 = arith.mulf %60, %61 : vector<2x8x8xf32>
    %cst_26 = arith.constant dense<0xFF800000> : vector<2x8xf32>
    %63 = vector.multi_reduction <maximumf>, %62, %cst_26 [2] : vector<2x8x8xf32> to vector<2x8xf32>
    %64 = vector.shape_cast %63 : vector<2x8xf32> to vector<2x8x1xf32>
    %65 = vector.broadcast %64 : vector<2x8x1xf32> to vector<2x8x8xf32>
    %66 = arith.subf %62, %65 : vector<2x8x8xf32>
    %67 = math.exp %66 : vector<2x8x8xf32>
    %cst_27 = arith.constant dense<0.000000e+00> : vector<2x8xf32>
    %68 = vector.multi_reduction <add>, %67, %cst_27 [2] : vector<2x8x8xf32> to vector<2x8xf32>
    %69 = vector.shape_cast %68 : vector<2x8xf32> to vector<2x8x1xf32>
    %70 = tpu.reciprocal %69 {approx = true} : vector<2x8x1xf32> -> vector<2x8x1xf32>
    %71 = vector.broadcast %70 : vector<2x8x1xf32> to vector<2x8x8xf32>
    %72 = arith.mulf %67, %71 : vector<2x8x8xf32>
    %73 = arith.addf %54, %72 : vector<2x8x8xf32>
    "tpu.trace_start"() <{level = 10 : i32, message = "bqk,bkd->bqd"}> : () -> ()
    %cst_28 = arith.constant dense<0.000000e+00> : vector<2x8x8xf32>
    %74 = tpu.matmul %72, %59, %cst_28 {dimension_numbers = #tpu.dot_dimension_numbers<[2], [1], [1], [2], [0, 0, 0, 1, 1, 2], [0], [0]>} : vector<2x8x8xf32>, vector<2x8x8xf32>, vector<2x8x8xf32> -> vector<2x8x8xf32>
    "tpu.trace_stop"() : () -> ()
    %c0_29 = arith.constant 0 : index
    %c0_30 = arith.constant 0 : index
    %c16 = arith.constant 16 : index
    %75 = vector.load %arg15[%c0_29, %c0_30, %c16] : memref<2x8x32xf32, #tpu.memory_space<vmem>>, vector<2x8x8xf32>
    tpu.vector_store %arg15[%c0_29, %c0_30, %c16], %74 {strides = array<i32>} : memref<2x8x32xf32, #tpu.memory_space<vmem>>, vector<2x8x8xf32>,
    %76 = vector.extract_strided_slice %13 {offsets = [0, 0, 24], sizes = [2, 8, 8], strides = [1, 1, 1]} : vector<2x8x32xf32> to vector<2x8x8xf32>
    %77 = vector.extract_strided_slice %15 {offsets = [0, 0, 24], sizes = [2, 8, 8], strides = [1, 1, 1]} : vector<2x8x32xf32> to vector<2x8x8xf32>
    %78 = vector.extract_strided_slice %17 {offsets = [0, 0, 24], sizes = [2, 8, 8], strides = [1, 1, 1]} : vector<2x8x32xf32> to vector<2x8x8xf32>
    "tpu.trace_start"() <{level = 10 : i32, message = "bqd,bkd->bqk"}> : () -> ()
    %cst_31 = arith.constant dense<0.000000e+00> : vector<2x8x8xf32>
    %79 = tpu.matmul %76, %77, %cst_31 {dimension_numbers = #tpu.dot_dimension_numbers<[2], [2], [1], [1], [0, 0, 0, 1, 1, 1], [0], [0]>} : vector<2x8x8xf32>, vector<2x8x8xf32>, vector<2x8x8xf32> -> vector<2x8x8xf32>
    "tpu.trace_stop"() : () -> ()
    %cst_32 = arith.constant 0.353553385 : f32
    %80 = vector.broadcast %cst_32 : f32 to vector<2x8x8xf32>
    %81 = arith.mulf %79, %80 : vector<2x8x8xf32>
    %cst_33 = arith.constant dense<0xFF800000> : vector<2x8xf32>
    %82 = vector.multi_reduction <maximumf>, %81, %cst_33 [2] : vector<2x8x8xf32> to vector<2x8xf32>
    %83 = vector.shape_cast %82 : vector<2x8xf32> to vector<2x8x1xf32>
    %84 = vector.broadcast %83 : vector<2x8x1xf32> to vector<2x8x8xf32>
    %85 = arith.subf %81, %84 : vector<2x8x8xf32>
    %86 = math.exp %85 : vector<2x8x8xf32>
    %cst_34 = arith.constant dense<0.000000e+00> : vector<2x8xf32>
    %87 = vector.multi_reduction <add>, %86, %cst_34 [2] : vector<2x8x8xf32> to vector<2x8xf32>
    %88 = vector.shape_cast %87 : vector<2x8xf32> to vector<2x8x1xf32>
    %89 = tpu.reciprocal %88 {approx = true} : vector<2x8x1xf32> -> vector<2x8x1xf32>
    %90 = vector.broadcast %89 : vector<2x8x1xf32> to vector<2x8x8xf32>
    %91 = arith.mulf %86, %90 : vector<2x8x8xf32>
    %92 = arith.addf %73, %91 : vector<2x8x8xf32>
    "tpu.trace_start"() <{level = 10 : i32, message = "bqk,bkd->bqd"}> : () -> ()
    %cst_35 = arith.constant dense<0.000000e+00> : vector<2x8x8xf32>
    %93 = tpu.matmul %91, %78, %cst_35 {dimension_numbers = #tpu.dot_dimension_numbers<[2], [1], [1], [2], [0, 0, 0, 1, 1, 2], [0], [0]>} : vector<2x8x8xf32>, vector<2x8x8xf32>, vector<2x8x8xf32> -> vector<2x8x8xf32>
    "tpu.trace_stop"() : () -> ()
    %c0_36 = arith.constant 0 : index
    %c0_37 = arith.constant 0 : index
    %c24 = arith.constant 24 : index
    %94 = vector.load %arg15[%c0_36, %c0_37, %c24] : memref<2x8x32xf32, #tpu.memory_space<vmem>>, vector<2x8x8xf32>
    tpu.vector_store %arg15[%c0_36, %c0_37, %c24], %93 {strides = array<i32>} : memref<2x8x32xf32, #tpu.memory_space<vmem>>, vector<2x8x8xf32>,
    %cst_38 = arith.constant 2.500000e-01 : f32
    %95 = vector.broadcast %cst_38 : f32 to vector<2x8x8xf32>
    %96 = arith.mulf %92, %95 : vector<2x8x8xf32>
    %c0_39 = arith.constant 0 : index
    %c0_40 = arith.constant 0 : index
    %c0_41 = arith.constant 0 : index
    %c0_42 = arith.constant 0 : index
    %97 = vector.load %arg13[%c0_39, %c0_40, %c0_41, %c0_42] : memref<1x2x8x8xf32, #tpu.memory_space<vmem>>, vector<1x2x8x8xf32>
    %98 = vector.shape_cast %97 : vector<1x2x8x8xf32> to vector<2x8x8xf32>
    %99 = vector.shape_cast %96 : vector<2x8x8xf32> to vector<1x2x8x8xf32>
    tpu.vector_store %arg13[%c0_39, %c0_40, %c0_41, %c0_42], %99 {strides = array<i32>} : memref<1x2x8x8xf32, #tpu.memory_space<vmem>>, vector<1x2x8x8xf32>,
    %c0_43 = arith.constant 0 : index
    %c0_44 = arith.constant 0 : index
    %c0_45 = arith.constant 0 : index
    %100 = vector.load %arg9[%c0_43, %c0_44, %c0_45] : memref<1x8x32xf32, #tpu.memory_space<vmem>>, vector<1x8x32xf32>
    %101 = vector.shape_cast %100 : vector<1x8x32xf32> to vector<8x32xf32>
    %102 = vector.extract_strided_slice %101 {offsets = [0, 0], sizes = [1, 32], strides = [1, 1]} : vector<8x32xf32> to vector<1x32xf32>
    %103 = vector.extract_strided_slice %101 {offsets = [1, 0], sizes = [1, 32], strides = [1, 1]} : vector<8x32xf32> to vector<1x32xf32>
    %104 = vector.extract_strided_slice %101 {offsets = [2, 0], sizes = [1, 32], strides = [1, 1]} : vector<8x32xf32> to vector<1x32xf32>
    %105 = vector.extract_strided_slice %101 {offsets = [3, 0], sizes = [1, 32], strides = [1, 1]} : vector<8x32xf32> to vector<1x32xf32>
    %106 = vector.extract_strided_slice %101 {offsets = [4, 0], sizes = [1, 32], strides = [1, 1]} : vector<8x32xf32> to vector<1x32xf32>
    %107 = vector.extract_strided_slice %101 {offsets = [5, 0], sizes = [1, 32], strides = [1, 1]} : vector<8x32xf32> to vector<1x32xf32>
    %c0_46 = arith.constant 0 : index
    %c0_47 = arith.constant 0 : index
    %c0_48 = arith.constant 0 : index
    %108 = vector.load %arg15[%c0_46, %c0_47, %c0_48] : memref<2x8x32xf32, #tpu.memory_space<vmem>>, vector<2x8x32xf32>
    %109 = vector.shape_cast %108 : vector<2x8x32xf32> to vector<16x32xf32>
    %110 = arith.truncf %109 : vector<16x32xf32> to vector<16x32xbf16>
    %c0_49 = arith.constant 0 : index
    %c0_50 = arith.constant 0 : index
    %c0_51 = arith.constant 0 : index
    %111 = vector.load %arg5[%c0_49, %c0_50, %c0_51] : memref<1x32x32xbf16, #tpu.memory_space<vmem>>, vector<1x32x32xbf16>
    %112 = vector.shape_cast %111 : vector<1x32x32xbf16> to vector<32x32xbf16>
    %cst_52 = arith.constant dense<0.000000e+00> : vector<16x32xf32>
    %113 = tpu.matmul %110, %112, %cst_52 {dimension_numbers = #tpu.dot_dimension_numbers<[1], [0], [0], [1], [0, 0, 1, 1], [], []>} : vector<16x32xbf16>, vector<32x32xbf16>, vector<16x32xf32> -> vector<16x32xf32>
    %114 = vector.broadcast %102 : vector<1x32xf32> to vector<16x32xf32>
    %115 = arith.addf %113, %114 : vector<16x32xf32>
    %116 = arith.addf %3, %115 : vector<16x32xf32>
    %cst_53 = arith.constant dense<0.000000e+00> : vector<16xf32>
    %117 = vector.multi_reduction <add>, %116, %cst_53 [1] : vector<16x32xf32> to vector<16xf32>
    %118 = vector.shape_cast %117 : vector<16xf32> to vector<16x1xf32>
    %cst_54 = arith.constant 3.200000e+01 : f32
    %119 = vector.broadcast %cst_54 : f32 to vector<16x1xf32>
    %120 = arith.divf %118, %119 : vector<16x1xf32>
    %121 = vector.broadcast %120 : vector<16x1xf32> to vector<16x32xf32>
    %122 = arith.subf %116, %121 : vector<16x32xf32>
    %123 = arith.mulf %122, %122 : vector<16x32xf32>
    %cst_55 = arith.constant dense<0.000000e+00> : vector<16xf32>
    %124 = vector.multi_reduction <add>, %123, %cst_55 [1] : vector<16x32xf32> to vector<16xf32>
    %125 = vector.shape_cast %124 : vector<16xf32> to vector<16x1xf32>
    %cst_56 = arith.constant 3.200000e+01 : f32
    %126 = vector.broadcast %cst_56 : f32 to vector<16x1xf32>
    %127 = arith.divf %125, %126 : vector<16x1xf32>
    %128 = vector.broadcast %120 : vector<16x1xf32> to vector<16x32xf32>
    %129 = arith.subf %116, %128 : vector<16x32xf32>
    %cst_57 = arith.constant 9.99999974E-6 : f32
    %130 = vector.broadcast %cst_57 : f32 to vector<16x1xf32>
    %131 = arith.addf %127, %130 : vector<16x1xf32>
    %132 = math.rsqrt %131 : vector<16x1xf32>
    %133 = vector.broadcast %132 : vector<16x1xf32> to vector<16x32xf32>
    %134 = arith.mulf %129, %133 : vector<16x32xf32>
    %135 = vector.broadcast %104 : vector<1x32xf32> to vector<16x32xf32>
    %136 = arith.mulf %134, %135 : vector<16x32xf32>
    %137 = vector.broadcast %105 : vector<1x32xf32> to vector<16x32xf32>
    %138 = arith.addf %136, %137 : vector<16x32xf32>
    %139 = arith.truncf %138 : vector<16x32xf32> to vector<16x32xbf16>
    %c0_58 = arith.constant 0 : index
    %c0_59 = arith.constant 0 : index
    %c0_60 = arith.constant 0 : index
    %140 = vector.load %arg6[%c0_58, %c0_59, %c0_60] : memref<1x32x64xbf16, #tpu.memory_space<vmem>>, vector<1x32x64xbf16>
    %141 = vector.shape_cast %140 : vector<1x32x64xbf16> to vector<32x64xbf16>
    %cst_61 = arith.constant dense<0.000000e+00> : vector<16x64xf32>
    %142 = tpu.matmul %139, %141, %cst_61 {dimension_numbers = #tpu.dot_dimension_numbers<[1], [0], [0], [1], [0, 0, 1, 1], [], []>} : vector<16x32xbf16>, vector<32x64xbf16>, vector<16x64xf32> -> vector<16x64xf32>
    %c0_62 = arith.constant 0 : index
    %c0_63 = arith.constant 0 : index
    %c0_64 = arith.constant 0 : index
    %143 = vector.load %arg7[%c0_62, %c0_63, %c0_64] : memref<1x1x64xf32, #tpu.memory_space<vmem>>, vector<1x1x64xf32>
    %144 = vector.shape_cast %143 : vector<1x1x64xf32> to vector<1x64xf32>
    %145 = vector.broadcast %144 : vector<1x64xf32> to vector<16x64xf32>
    %146 = arith.addf %142, %145 : vector<16x64xf32>
    %cst_65 = arith.constant 0.000000e+00 : f32
    %147 = vector.broadcast %cst_65 : f32 to vector<16x64xf32>
    %148 = arith.maximumf %146, %147 : vector<16x64xf32>
    %149 = arith.truncf %148 : vector<16x64xf32> to vector<16x64xbf16>
    %c0_66 = arith.constant 0 : index
    %c0_67 = arith.constant 0 : index
    %c0_68 = arith.constant 0 : index
    %150 = vector.load %arg8[%c0_66, %c0_67, %c0_68] : memref<1x64x32xbf16, #tpu.memory_space<vmem>>, vector<1x64x32xbf16>
    %151 = vector.shape_cast %150 : vector<1x64x32xbf16> to vector<64x32xbf16>
    %cst_69 = arith.constant dense<0.000000e+00> : vector<16x32xf32>
    %152 = tpu.matmul %149, %151, %cst_69 {dimension_numbers = #tpu.dot_dimension_numbers<[1], [0], [0], [1], [0, 0, 1, 1], [], []>} : vector<16x64xbf16>, vector<64x32xbf16>, vector<16x32xf32> -> vector<16x32xf32>
    %153 = vector.broadcast %103 : vector<1x32xf32> to vector<16x32xf32>
    %154 = arith.addf %152, %153 : vector<16x32xf32>
    %155 = arith.addf %138, %154 : vector<16x32xf32>
    %cst_70 = arith.constant dense<0.000000e+00> : vector<16xf32>
    %156 = vector.multi_reduction <add>, %155, %cst_70 [1] : vector<16x32xf32> to vector<16xf32>
    %157 = vector.shape_cast %156 : vector<16xf32> to vector<16x1xf32>
    %cst_71 = arith.constant 3.200000e+01 : f32
    %158 = vector.broadcast %cst_71 : f32 to vector<16x1xf32>
    %159 = arith.divf %157, %158 : vector<16x1xf32>
    %160 = vector.broadcast %159 : vector<16x1xf32> to vector<16x32xf32>
    %161 = arith.subf %155, %160 : vector<16x32xf32>
    %162 = arith.mulf %161, %161 : vector<16x32xf32>
    %cst_72 = arith.constant dense<0.000000e+00> : vector<16xf32>
    %163 = vector.multi_reduction <add>, %162, %cst_72 [1] : vector<16x32xf32> to vector<16xf32>
    %164 = vector.shape_cast %163 : vector<16xf32> to vector<16x1xf32>
    %cst_73 = arith.constant 3.200000e+01 : f32
    %165 = vector.broadcast %cst_73 : f32 to vector<16x1xf32>
    %166 = arith.divf %164, %165 : vector<16x1xf32>
    %167 = vector.broadcast %159 : vector<16x1xf32> to vector<16x32xf32>
    %168 = arith.subf %155, %167 : vector<16x32xf32>
    %cst_74 = arith.constant 9.99999974E-6 : f32
    %169 = vector.broadcast %cst_74 : f32 to vector<16x1xf32>
    %170 = arith.addf %166, %169 : vector<16x1xf32>
    %171 = math.rsqrt %170 : vector<16x1xf32>
    %172 = vector.broadcast %171 : vector<16x1xf32> to vector<16x32xf32>
    %173 = arith.mulf %168, %172 : vector<16x32xf32>
    %174 = vector.broadcast %106 : vector<1x32xf32> to vector<16x32xf32>
    %175 = arith.mulf %173, %174 : vector<16x32xf32>
    %176 = vector.broadcast %107 : vector<1x32xf32> to vector<16x32xf32>
    %177 = arith.addf %175, %176 : vector<16x32xf32>
    %c0_75 = arith.constant 0 : index
    %c0_76 = arith.constant 0 : index
    %178 = vector.load %arg14[%c0_75, %c0_76] : memref<16x32xf32, #tpu.memory_space<vmem>>, vector<16x32xf32>
    tpu.vector_store %arg14[%c0_75, %c0_76], %177 {strides = array<i32>} : memref<16x32xf32, #tpu.memory_space<vmem>>, vector<16x32xf32>,
    %c1_i32 = arith.constant 1 : i32
    %179 = arith.cmpi eq, %arg1, %c1_i32 : i32
    %180 = arith.extui %179 : i1 to i32
    %c0_i32_77 = arith.constant 0 : i32
    %181 = arith.cmpi ne, %180, %c0_i32_77 : i32
    scf.if %181 {
      %c0_78 = arith.constant 0 : index
      %c0_79 = arith.constant 0 : index
      %182 = vector.load %arg10[%c0_78, %c0_79] : memref<1x32xf32, #tpu.memory_space<vmem>>, vector<1x32xf32>
      %c0_80 = arith.constant 0 : index
      %c0_81 = arith.constant 0 : index
      %183 = vector.load %arg11[%c0_80, %c0_81] : memref<1x32xf32, #tpu.memory_space<vmem>>, vector<1x32xf32>
      %cst_82 = arith.constant dense<0.000000e+00> : vector<16xf32>
      %184 = vector.multi_reduction <add>, %177, %cst_82 [1] : vector<16x32xf32> to vector<16xf32>
      %185 = vector.shape_cast %184 : vector<16xf32> to vector<16x1xf32>
      %cst_83 = arith.constant 3.200000e+01 : f32
      %186 = vector.broadcast %cst_83 : f32 to vector<16x1xf32>
      %187 = arith.divf %185, %186 : vector<16x1xf32>
      %188 = vector.broadcast %187 : vector<16x1xf32> to vector<16x32xf32>
      %189 = arith.subf %177, %188 : vector<16x32xf32>
      %190 = arith.mulf %189, %189 : vector<16x32xf32>
      %cst_84 = arith.constant dense<0.000000e+00> : vector<16xf32>
      %191 = vector.multi_reduction <add>, %190, %cst_84 [1] : vector<16x32xf32> to vector<16xf32>
      %192 = vector.shape_cast %191 : vector<16xf32> to vector<16x1xf32>
      %cst_85 = arith.constant 3.200000e+01 : f32
      %193 = vector.broadcast %cst_85 : f32 to vector<16x1xf32>
      %194 = arith.divf %192, %193 : vector<16x1xf32>
      %195 = vector.broadcast %187 : vector<16x1xf32> to vector<16x32xf32>
      %196 = arith.subf %177, %195 : vector<16x32xf32>
      %cst_86 = arith.constant 9.99999974E-6 : f32
      %197 = vector.broadcast %cst_86 : f32 to vector<16x1xf32>
      %198 = arith.addf %194, %197 : vector<16x1xf32>
      %199 = math.rsqrt %198 : vector<16x1xf32>
      %200 = vector.broadcast %199 : vector<16x1xf32> to vector<16x32xf32>
      %201 = arith.mulf %196, %200 : vector<16x32xf32>
      %202 = vector.broadcast %182 : vector<1x32xf32> to vector<16x32xf32>
      %203 = arith.mulf %201, %202 : vector<16x32xf32>
      %204 = vector.broadcast %183 : vector<1x32xf32> to vector<16x32xf32>
      %205 = arith.addf %203, %204 : vector<16x32xf32>
      %206 = vector.shape_cast %205 : vector<16x32xf32> to vector<2x8x32xf32>
      %c0_87 = arith.constant 0 : index
      %c0_88 = arith.constant 0 : index
      %c0_89 = arith.constant 0 : index
      %207 = vector.load %arg12[%c0_87, %c0_88, %c0_89] : memref<2x8x32xf32, #tpu.memory_space<vmem>>, vector<2x8x32xf32>
      tpu.vector_store %arg12[%c0_87, %c0_88, %c0_89], %206 {strides = array<i32>} : memref<2x8x32xf32, #tpu.memory_space<vmem>>, vector<2x8x32xf32>,
    } else {
    }
    return
  }
  func.func @transform_0(%arg0: i32, %arg1: i32) -> (i32, i32, i32) {
    %c0_i32 = arith.constant 0 : i32
    %c0_i32_0 = arith.constant 0 : i32
    %c0_i32_1 = arith.constant 0 : i32
    return %arg0, %c0_i32, %c0_i32_0 : i32, i32, i32
  }
  func.func @transform_1(%arg0: i32, %arg1: i32) -> (i32, i32, i32) {
    %c0_i32 = arith.constant 0 : i32
    %c0_i32_0 = arith.constant 0 : i32
    %c0_i32_1 = arith.constant 0 : i32
    return %arg1, %c0_i32, %c0_i32_0 : i32, i32, i32
  }
  func.func @transform_2(%arg0: i32, %arg1: i32) -> (i32, i32, i32) {
    %c0_i32 = arith.constant 0 : i32
    %c0_i32_0 = arith.constant 0 : i32
    %c0_i32_1 = arith.constant 0 : i32
    return %arg1, %c0_i32, %c0_i32_0 : i32, i32, i32
  }
  func.func @transform_3(%arg0: i32, %arg1: i32) -> (i32, i32, i32) {
    %c0_i32 = arith.constant 0 : i32
    %c0_i32_0 = arith.constant 0 : i32
    %c0_i32_1 = arith.constant 0 : i32
    return %arg1, %c0_i32, %c0_i32_0 : i32, i32, i32
  }
  func.func @transform_4(%arg0: i32, %arg1: i32) -> (i32, i32, i32) {
    %c0_i32 = arith.constant 0 : i32
    %c0_i32_0 = arith.constant 0 : i32
    %c0_i32_1 = arith.constant 0 : i32
    return %arg1, %c0_i32, %c0_i32_0 : i32, i32, i32
  }
  func.func @transform_5(%arg0: i32, %arg1: i32) -> (i32, i32, i32) {
    %c0_i32 = arith.constant 0 : i32
    %c0_i32_0 = arith.constant 0 : i32
    %c0_i32_1 = arith.constant 0 : i32
    return %arg1, %c0_i32, %c0_i32_0 : i32, i32, i32
  }
  func.func @transform_6(%arg0: i32, %arg1: i32) -> (i32, i32, i32) {
    %c0_i32 = arith.constant 0 : i32
    %c0_i32_0 = arith.constant 0 : i32
    %c0_i32_1 = arith.constant 0 : i32
    return %arg1, %c0_i32, %c0_i32_0 : i32, i32, i32
  }
  func.func @transform_7(%arg0: i32, %arg1: i32) -> (i32, i32, i32) {
    %c0_i32 = arith.constant 0 : i32
    %c0_i32_0 = arith.constant 0 : i32
    %c0_i32_1 = arith.constant 0 : i32
    return %arg1, %c0_i32, %c0_i32_0 : i32, i32, i32
  }
  func.func @transform_8(%arg0: i32, %arg1: i32) -> (i32, i32) {
    %c0_i32 = arith.constant 0 : i32
    %c0_i32_0 = arith.constant 0 : i32
    %c0_i32_1 = arith.constant 0 : i32
    return %c0_i32, %c0_i32_0 : i32, i32
  }
  func.func @transform_9(%arg0: i32, %arg1: i32) -> (i32, i32) {
    %c0_i32 = arith.constant 0 : i32
    %c0_i32_0 = arith.constant 0 : i32
    %c0_i32_1 = arith.constant 0 : i32
    return %c0_i32, %c0_i32_0 : i32, i32
  }
  func.func @transform_10(%arg0: i32, %arg1: i32) -> (i32, i32, i32) {
    %c0_i32 = arith.constant 0 : i32
    %c0_i32_0 = arith.constant 0 : i32
    %c0_i32_1 = arith.constant 0 : i32
    return %arg0, %c0_i32, %c0_i32_0 : i32, i32, i32
  }
  func.func @transform_11(%arg0: i32, %arg1: i32) -> (i32, i32, i32, i32) {
    %c0_i32 = arith.constant 0 : i32
    %c0_i32_0 = arith.constant 0 : i32
    %c0_i32_1 = arith.constant 0 : i32
    return %arg1, %arg0, %c0_i32, %c0_i32_0 : i32, i32, i32, i32
  }
}

</mosaic_0001>

<bundles_post_ra>
// kernel: tpu_custom_call.1
= control target key start
LH: loop header
LB: loop body
LE: loop exit
PB: predicated region body
PF: predicated region fallthrough
CT: control target
= control target key end

     0   :  { %s3738_s0 = inlined_call_operand.hbm [shape: f32[2,8,32], index: 0, kind: input, shape index: {}]   ;;  %s3739_s1 = inlined_call_operand.vmem [shape: bf16[2,32,96], index: 1, kind: input, shape index: {}]   ;;  %s3740_s2 = inlined_call_operand.vmem [shape: f32[2,1,96], index: 2, kind: input, shape index: {}]   ;;  %s3741_s3 = inlined_call_operand.vmem [shape: bf16[2,32,32], index: 3, kind: input, shape index: {}]   ;;  %s3742_s4 = inlined_call_operand.vmem [shape: bf16[2,32,64], index: 4, kind: input, shape index: {}]   ;;  %s3743_s5 = inlined_call_operand.hbm [shape: f32[2,1,64], index: 5, kind: input, shape index: {}]   ;;  %s3744_s6 = inlined_call_operand.vmem [shape: bf16[2,64,32], index: 6, kind: input, shape index: {}]   ;;  %s3745_s7 = inlined_call_operand.vmem [shape: f32[2,8,32], index: 7, kind: input, shape index: {}]   ;;  %s3746_s8 = inlined_call_operand.vmem [shape: f32[1,32], index: 8, kind: input, shape index: {}]   ;;  %s3747_s9 = inlined_call_operand.vmem [shape: f32[1,32], index: 9, kind: input, shape index: {}]   ;;  %s3748_s10 = inlined_call_operand.hbm [shape: f32[2,8,32], index: 10, kind: output, shape index: {0}]   ;;  %s3749_s11 = inlined_call_operand.hbm [shape: f32[2,2,8,8], index: 11, kind: output, shape index: {1}]  }
   0x1   :  { %3764 = sst [smem:[#allocation24_spill]] %s3738_s0 }
   0x2   :  { %3765 = sst [smem:[#allocation25_spill]] %s3743_s5 }
   0x3   :  { %3766 = sst [smem:[#allocation26_spill]] %s3749_s11 }
   0x4   :  { %17 = vsyncpa [#allocation5], 0 }
   0x5   :  { %18 = vsyncpa [#allocation8], 0 }
   0x6   :  { %20 = vsyncpa [#allocation8 + $0x1], 0 }
   0x7   :  { %21 = vsyncpa [#allocation6], 0 }
   0x8   :  { %22 = vsyncpa [#allocation11], 0 }
   0x9   :  { %24 = vsyncpa [#allocation11 + $0x1], 0  ;;  %s3221_s17 = smov 0   ;;  %s3223_s18 = smov 0  }
   0xa   :  { %s3225_s19 = smov 0   ;;  %s3227_s20 = smov 0  }
   0xb   :  { %s3229_s21 = smov 0   ;;  %s3231_s22 = smov 0  }
   0xc LB: > { %3767 = sst [smem:[#allocation16_spill]] %s3116_s17  ;;  %s2573_s23 = sadd.s32 4294967295, %s3136_s22   ;;  %s3136_s22 = sphi %s3231_s22, %s30_s22   ;;  %s3132_s21 = sphi %s3229_s21, %s3802_s21   ;;  %s3128_s20 = sphi %s3227_s20, %s3801_s20   ;;  %s3124_s19 = sphi %s3225_s19, %s3800_s19   ;;  %s3120_s18 = sphi %s3223_s18, %s3799_s18   ;;  %s3116_s17 = sphi %s3221_s17, %s3798_s17  }
   0xd   : > { %3768 = sst [smem:[#allocation17_spill]] %s3120_s18  ;;  %s2574_s24 = sadd.s32 4294967294, %s3136_s22  }
   0xe   : > { %3769 = sst [smem:[#allocation18_spill]] %s3124_s19  ;;  %p192_p0 = scmp.ne.s32.totalorder %s3120_s18, %s3116_s17 }
   0xf   : > { %3770 = sst [smem:[#allocation19_spill]] %s3132_s21  ;;  %p3255_p1 = scmp.eq.s32.totalorder %s2573_s23, 0 }
  0x10   : > { %3771 = sst [smem:[#allocation20_spill]] %s3136_s22  ;;  %p3259_p2 = scmp.eq.s32.totalorder %s2573_s23, 1 }
  0x11   : > { %s3772_s25 = scalar_select %p3255_p1, 1, 0 }
  0x12   : > { %s3773_s26 = scalar_select %p3259_p2, 1, 0 }
  0x13   : > { %p344_p3 = scmp.eq.s32.totalorder %s2574_s24, 1  ;;  %p3265_p4 = por %p3255_p1, %p192_p0 }
  0x14   : > { %p2575_p5 = scmp.ge.s32.totalorder %s3136_s22, 1  ;;  %p351_p7 = scmp.lt.s32.totalorder %s3136_s22, 3 }
  0x15   : > { %s3774_s27 = scalar_select %p3265_p4, 1, 0 }
  0x16   : > { %p3270_p6 = por %p344_p3, %p192_p0  ;;  %p3275_p8 = pnand %p2575_p5, %p351_p7 }
  0x17   : > { %s3138_s30 = smov [#allocation4]   ;;  %s39_s14 = sadd.s32 1, %s3132_s21 }
  0x18   : > { %s3775_s28 = scalar_select %p3270_p6, 1, 0 }
  0x19   : > { %s3777_s29 = scalar_select %p3275_p8, 1, 0 }
  0x1a   : > { %3776 = sst [smem:[#allocation21_spill]] %s3775_s28  ;;  %s366_s12 = sshll.u32 %s3138_s30, 4  ;;  %s367_s12 = int_to_ptr.vmem [resolvable:$true] %s366_s12 }
  0x1b   : > { %p2821_p9 = pneg %p3275_p8  ;;  %s3779_s0 = sld [smem:[#allocation24_spill]] }
  0x1d   : > { %p3284_p11 = pnand %p2821_p9, %p3255_p1 }
  0x1f   : > { %p2964_p13 = pneg %p3284_p11 }
  0x21   : > { %s2962_s23 = scalar_lea.hbm %s3779_s0, 256 }
  0x22   : > { %p2963_p12 = scmp.ne.s32.totalorder %s3779_s0, %s2962_s23  ;;  %p2969_p5 = scmp.lt.u32.totalorder %s2962_s23, %s3779_s0 }
  0x24   : > { %p2965_p0 = pnand %p2964_p13, %p2963_p12 }
  0x26   : > { %p2966_p3 = pneg %p2965_p0 }
  0x28   : > { %p2971_p7 = pnand %p2969_p5, %p2966_p3 }
  0x2a   : > { %2974 = shalt.err (!%p2971_p7)
}
  0x2b   : > { %s2975_s11 = scalar_lea.vmem %s367_s12, 256  ;;  %p2983_p4 = scmp.lt.s32.totalorder %s367_s12, %s367_s12 }
  0x2c   : > { %p2976_p9 = scmp.ne.s32.totalorder %s367_s12, %s2975_s11  ;;  %p2984_p1 = scmp.lt.s32.totalorder %s2975_s11, %s2975_s11 }
  0x2e   : > { %p2978_p10 = pnand %p2976_p9, %p2964_p13  ;;  %p2985_p8 = por %p2984_p1, %p2983_p4 }
  0x30   : > { %p2979_p6 = pneg %p2978_p10 }
  0x32   : > { %p2986_p2 = pnand %p2985_p8, %p2979_p6 }
  0x34   : > { %2989 = shalt.err (!%p2986_p2)
}
  0x35   : > { %s3139_s28 = smov 128   ;;  %s3140_s17 = smov 8  }
  0x36   : > { %2824 = dma.hbm_to_vmem [thread:$0]  (!%p3284_p11), %s3779_s0, 256, %s367_s12, [#allocation5], %s3139_s28, %s3139_s28, %s3140_s17  }
  0x37   : > { %p40_p1 = scmp.ge.s32.totalorder %s39_s14, 2  ;;  %p186_p2 = scmp.ne.s32.totalorder %s3124_s19, %s3120_s18 }
  0x38   : > { %p187_p4 = scmp.eq.s32.totalorder %s3136_s22, 0  ;;  %s179_s11 = sadd.s32 1, %s3124_s19 }
  0x39   : > { %s3804_s14 = smov (%p40_p1, %s39_s14), 0  ;;  %p3781_p6 = scmp.ne.s32.totalorder %s3773_s26, 0 }
  0x3a   : > { %3780 = sst [smem:[#allocation22_spill]] %s3804_s14  ;;  %s176_s24 = ssub.s32 %s3132_s21, %s3804_s14 }
  0x3b   : > { %p3313_p8 = por %p3781_p6, %p186_p2  ;;  %p188_p10 = por %p187_p4, %p186_p2 }
  0x3c   : > { %p177_p12 = scmp.eq.s32.totalorder %s176_s24, 0  ;;  %s416_s13 = sand.u32 1, %s3124_s19  }
  0x3d   : > { %p2834_p13 = scmp.lt.s32.totalorder %s3136_s22, 2  ;;  %s2578_s12 = sshll.u32 %s3132_s21, 4 }
  0x3e   : > { %s3322_s30 = scalar_select %p177_p12, %s3124_s19, %s179_s11  }
  0x3f   : > { %s419_s28 = scalar_lea.vmem [#allocation7], %s416_s13  ;;  %s3784_s5 = sld [smem:[#allocation25_spill]] }
  0x40   : > { %3783 = sst [smem:[#allocation23_spill]] %s3322_s30  ;;  %s426_s17 = sshll.u32 %s419_s28, 4  ;;  %s3330_s17 = int_to_ptr.vmem [resolvable:$true] %s426_s17 }
  0x41   : > { %p3332_p11 = pnand %p2834_p13, %p188_p10  ;;  %s417_s11 = scalar_lea.sflag [#allocation8], %s416_s13 }
  0x43   : > { %p2992_p3 = pneg %p3332_p11 }
  0x45   : > { %s3328_s0 = scalar_lea.hbm %s3784_s5, %s2578_s12  ;;  %s2995_s15 = scalar_lea.hbm %s3784_s5, 32 }
  0x46   : > { %s2990_s14 = scalar_lea.hbm %s3328_s0, 16  ;;  %p2996_p9 = scmp.lt.u32.totalorder %s3328_s0, %s3784_s5 }
  0x47   : > { %p2991_p0 = scmp.ne.s32.totalorder %s3328_s0, %s2990_s14  ;;  %p2997_p1 = scmp.lt.u32.totalorder %s2995_s15, %s2990_s14 }
  0x48   : > { %p2999_p4 = scmp.lt.u32.totalorder %s2990_s14, %s3328_s0 }
  0x49   : > { %p2993_p5 = pnand %p2992_p3, %p2991_p0  ;;  %p2998_p2 = por %p2997_p1, %p2996_p9 }
  0x4b   : > { %p2994_p7 = pneg %p2993_p5  ;;  %p3000_p6 = por %p2999_p4, %p2998_p2 }
  0x4d   : > { %p3001_p10 = pnand %p3000_p6, %p2994_p7 }
  0x4f   : > { %3004 = shalt.err (!%p3001_p10)
}
  0x50   : > { %s3005_s13 = scalar_lea.vmem %s3330_s17, 16  ;;  %s3141_s12 = smov [#allocation7]  }
  0x51   : > { %p3006_p12 = scmp.ne.s32.totalorder %s3330_s17, %s3005_s13  ;;  %s3010_s28 = sshll.u32 %s3141_s12, 4  ;;  %s3011_s28 = int_to_ptr.vmem [resolvable:$false] %s3010_s28 }
  0x52   : > { %s3012_s21 = scalar_lea.vmem %s3011_s28, 32  ;;  %p3013_p5 = scmp.lt.s32.totalorder %s3330_s17, %s3011_s28 }
  0x53   : > { %p3008_p13 = pnand %p3006_p12, %p2992_p3  ;;  %p3014_p9 = scmp.lt.s32.totalorder %s3012_s21, %s3005_s13 }
  0x55   : > { %p3009_p0 = pneg %p3008_p13  ;;  %p3015_p1 = por %p3014_p9, %p3013_p5 }
  0x57   : > { %p3016_p2 = pnand %p3015_p1, %p3009_p0 }
  0x59   : > { %3019 = shalt.err (!%p3016_p2)
}
  0x5a   : > { %2828 = dma.hbm_to_vmem [thread:$0]  (!%p3332_p11), %s3328_s0, 16, %s3330_s17, %s417_s11  }
  0x5b   : > { %p3786_p7 = scmp.ne.s32.totalorder %s3777_s29, 0 }
  0x5c   : > { %p3787_p3 = scmp.ne.s32.totalorder (!%p3786_p7), %s3772_s25, 0 }
  0x5d   : > { %450 = sbr.rel (%p3786_p7) target bundleno = 4572 (0x11dc), region = 60 }
  0x64   : > { %3099 = dma.done.wait (%p3787_p3), [#allocation5], 256  }
  0x65   : > { %3101 = vsyncadd (%p3787_p3), [#allocation5], 4294967040  ;;  %s3368_s14 = sand.u32 1, %s3120_s18   ;;  %p3788_p4 = scmp.ne.s32.totalorder %s3774_s27, 0 }
  0x66   : > { %s457_s15 = scalar_lea.sflag [#allocation8], %s3368_s14 }
  0x67   : > { %3103 = dma.done.wait (%p3788_p4), %s457_s15, 16  }
  0x68   : > { %3105 = vsyncadd (%p3788_p4), %s457_s15, 4294967280  ;;  %s2581_s0 = sshll.u32 %s3368_s14, 4  ;;  %p525_p11 = scmp.lt.s32.totalorder %s3128_s20, 1 }
  0x69   : > { %s3411_s28 = scalar_lea.vmem [#allocation10], %s2581_s0  ;;  %p2591_p6 = scmp.ne.s32.totalorder %s3128_s20, 0 }
  0x6a   : > { %s3379_s25 = scalar_select %p525_p11, %s3128_s20, 1 }
  0x6b   : > { %558 = sbr.rel (%p2591_p6) target bundleno = 114 (0x72), region = 72  ;;  %v559_v0 = vld [vmem:[#allocation4] sm:$0xff] (!%p2591_p6)  ;;  %vm561_vm0 = vcmask (!%p2591_p6), 261120   ;;  %v560_v1 = vld [vmem:[#allocation4 + $0x8] sm:$0xff] (!%p2591_p6) }
  0x6c   : > { %s2642_s29 = sshll.u32 %s3379_s25, 4  ;;  %s2645_s19 = sshll.u32 %s3379_s25, 5  ;;  %562 = vst.msk [vmem:[#allocation2] sm:$0xff] (!%p2591_p6), %vm561_vm0, %v559_v0  ;;  %563 = vst.msk [vmem:[#allocation2 + $0x8] sm:$0xff] (!%p2591_p6), %vm561_vm0, %v560_v1 }
  0x6d   : > { %s529_s27 = scalar_lea.vmem %s3739_s1, %s2642_s29  ;;  %s3392_s15 = scalar_lea.vmem %s3741_s3, %s2642_s29 }
  0x6e   : > { %s3397_s30 = scalar_lea.vmem %s3742_s4, %s2642_s29  ;;  %s3403_s17 = scalar_lea.vmem %s3744_s6, %s2645_s19 }
  0x6f   : > { %s2590_s11 = sshll.u32 %s3379_s25, 3 }
  0x70   : > { %s3409_s12 = scalar_lea.vmem %s3745_s7, %s2590_s11 }
  0x72 PF: > { %v2908_v2 = vld [vmem:[%s529_s27] sm:$0xff]   ;;  %v3142_v3 = vmov 0.0   ;;  %v2909_v4 = vld [vmem:[%s529_s27 + $0x8] sm:$0xff]   ;;  %vm3143_vm1 = vmmov 0   ;;  %vm590_vm2 = vcmask 261120   ;;  %s3789_s19 = scalar_lea.vmem %s3740_s2, %s3379_s25  ;;  %s3144_s22 = smov 96  }
  0x73   : > { %2693 = vmatprep.subr.bf16.mxu0 %v3142_v3  ;;  %2706 = vmatprep.subr.mxu1 %v3142_v3  ;;  %v3418_v5 = vld [vmem:[#allocation2] sm:$0xff]  ;;  %v3420_v6 = vld [vmem:[#allocation2 + $0x8] sm:$0xff]  ;;  %vm638_vm3 = vcmask 64512   ;;  %s3145_s24 = smov 64   ;;  %s3146_s0 = smov 88   ;;  %vm1312_vm4 = vcmask 130112  }
  0x74   : > { %2694 = vmatpush3.bf16.msra.mxu0 %v2908_v2  ;;  %2697 = vmatprep.mubr.msk.bf16.mxu0 %vm3143_vm1, %v3142_v3  ;;  %v566_v7 = vpack.c.bf16 %v3420_v6, %v3418_v5  ;;  %v2592_v8 = vld [vmem:[%s3789_s19] ss:$0 sm:$0xff]  ;;  %s3147_s25 = smov 120   ;;  %s3148_s29 = smov 56   ;;  %vm1657_vm5 = vcmask 195712   ;;  %vm2002_vm6 = vcmask 261312  }
  0x75   : > { %2695 = vmatprep.subr.bf16.mxu0 %v3142_v3  ;;  %2708 = vmatprep.mubr.msk.f32.mxu1 %vm3143_vm1, %v3142_v3  ;;  %s3149_s16 = smov 80   ;;  %s3150_s27 = smov 112   ;;  %vm2225_vm7 = vcmask 523264  }
  0x76   : > { %s3151_s21 = smov 48   ;;  %s3152_s11 = smov 72  }
  0x77   : > { %s3153_s13 = smov 104   ;;  %s3154_s5 = smov 40  }
  0x78   : > { %2696 = vmatpush3.bf16.msra.mxu0 %v2909_v4  ;;  %s3155_s18 = smov 8   ;;  %s3156_s19 = smov 16  }
  0x79   : > { %2701 = vmatprep.subr.mxu0 %v3142_v3  ;;  %p2632_p10 = scmp.ne.s32.totalorder %s3128_s20, 1 }
  0x7b   : > { %2698 = vmatmul.mubr.msk.bf16.vlgmr.msra.gmra.mrb[0].mxu0 %vm590_vm2, %v566_v7 }
  0x7c   : > { %2703 = vmatprep.mubr.msk.f32.mxu0 %vm3143_vm1, %v3142_v3 }
 0x14e   : > { %v628_v9 = vpop.f32.mrb[0].mxu0 }
 0x14f   : > { %v3436_v10 = vadd.f32 %v2592_v8, %v628_v9  ;;  %v2699_v11 = vpop.f32.mrb[1].mxu0 }
 0x150   : > { %v631_v12 = vpop.f32.mrb[2].mxu0 }
 0x151   : > { %636 = vrot.lane.b32.xlu0 %v3436_v10, %s3144_s22  ;;  %v2700_v13 = vpop.f32.mrb[3].mxu0  ;;  %v3439_v14 = vadd.f32 %v2592_v8, %v631_v12 }
 0x155   : > { %714 = vrot.lane.b32.xlu0 %v3439_v14, %s3144_s22  ;;  %s3157_s22 = smov 24  }
 0x1c3   : > { %v637_v15 = vpop.permute.xlu0 %636 }
 0x1c4   : > { %2702 = vmatpush3.xpose.msk.msra.mxu0 %vm638_vm3, %v637_v15 }
 0x1c5   : > { %2716 = vmatprep.subr.mxu0 %v3142_v3 }
 0x1c7   : > { %2704 = vmatmul.mubr.msk.f32.vlgmr.msra.gmra.mrb[4].mxu0 %vm638_vm3, %v3436_v10  ;;  %v715_v16 = vpop.permute.xlu0 %714 }
 0x1c8   : > { %2707 = vmatpush3.xpose.msk.msra.mxu1 %vm638_vm3, %v715_v16  ;;  %2718 = vmatprep.mubr.msk.f32.mxu0 %vm3143_vm1, %v3142_v3 }
 0x1c9   : > { %2711 = vmatprep.subr.mxu1 %v3142_v3 }
 0x1cb   : > { %2709 = vmatmul.mubr.msk.f32.vlgmr.msra.gmra.mrb[0].mxu1 %vm638_vm3, %v3439_v14 }
 0x1cc   : > { %2713 = vmatprep.mubr.msk.f32.mxu1 %vm3143_vm1, %v3142_v3 }
 0x29a   : > { %v709_v17 = vpop.f32.mrb[4].mxu0 }
 0x29b   : > { %v790_v18 = vmul.f32 0.35355338, %v709_v17  ;;  %v2705_v19 = vpop.f32.mrb[5].mxu0 }
 0x29d   : > { %v792_v20 = vsel %vm638_vm3, %v790_v18, -inf }
 0x29e   : > { %v786_v21 = vpop.f32.mrb[0].mxu1  ;;  %793 = vmax.xlane.f32.xlu1 %v792_v20 }
 0x29f   : > { %v791_v22 = vmul.f32 0.35355338, %v786_v21  ;;  %v2710_v23 = vpop.f32.mrb[1].mxu1 }
 0x2a1   : > { %v795_v24 = vsel %vm638_vm3, %v791_v22, -inf }
 0x2a2   : > { %796 = vmax.xlane.f32.xlu1 %v795_v24 }
 0x2b3   : > { %816 = vrot.lane.b32.xlu1 %v3436_v10, %s3145_s24 }
 0x2b7   : > { %892 = vrot.lane.b32.xlu1 %v3439_v14, %s3145_s24 }
 0x2bb   : > { %972 = vrot.lane.b32.xlu1 %v3436_v10, %s3146_s0 }
 0x2bf   : > { %1050 = vrot.lane.b32.xlu1 %v3439_v14, %s3146_s0 }
 0x32b   : > { %v794_v25 = vpop.xlane.xlu1 %793 }
 0x32c   : > { %v798_v26 = vsub.f32 %v790_v18, %v794_v25 }
 0x32e   : > { %v800_v27 = vmul.f32 1.442695, %v798_v26 }
 0x32f   : > { %v797_v28 = vpop.xlane.xlu1 %796 }
 0x330   : > { %2918 = vpow2.f32 %v800_v27  ;;  %v799_v29 = vsub.f32 %v791_v22, %v797_v28 }
 0x332   : > { %v802_v30 = vmul.f32 1.442695, %v799_v29 }
 0x333   : > { %v817_v31 = vpop.permute.xlu1 %816 }
 0x334   : > { %2920 = vpow2.f32 %v802_v30  ;;  %2712 = vmatpush3.msra.mxu1 %v817_v31 }
 0x335   : > { %2721 = vmatprep.subr.mxu1 %v3142_v3 }
 0x337   : > { %v893_v32 = vpop.permute.xlu1 %892 }
 0x338   : > { %2717 = vmatpush3.msra.mxu0 %v893_v32 }
 0x339   : > { %2726 = vmatprep.subr.mxu0 %v3142_v3 }
 0x33a   : > { %v2919_v33 = vpop.eup %2918 }
 0x33b   : > { %v804_v34 = vsel %vm638_vm3, %v2919_v33, 0.0  ;;  %v973_v37 = vpop.permute.xlu1 %972 }
 0x33c   : > { %805 = vadd.xlane.f32.xlu0 %v804_v34 }
 0x33e   : > { %v2921_v35 = vpop.eup %2920 }
 0x33f   : > { %v807_v36 = vsel %vm638_vm3, %v2921_v35, 0.0  ;;  %v1051_v38 = vpop.permute.xlu1 %1050 }
 0x340   : > { %808 = vadd.xlane.f32.xlu1 %v807_v36 }
 0x351   : > { %1048 = vrot.lane.b32.xlu1 %v3439_v14, %s3147_s25 }
 0x352   : > { %970 = vrot.lane.b32.xlu0 %v3436_v10, %s3147_s25 }
 0x3c9   : > { %v806_v39 = vpop.xlane.xlu0 %805 }
 0x3ca   : > { %2922 = vrcp.f32 %v806_v39 }
 0x3cd   : > { %v809_v40 = vpop.xlane.xlu1 %808  ;;  %v971_v45 = vpop.permute.xlu0 %970 }
 0x3ce   : > { %2924 = vrcp.f32 %v809_v40 }
 0x3d1   : > { %v1049_v46 = vpop.permute.xlu1 %1048 }
 0x3d4   : > { %v2923_v41 = vpop.eup %2922 }
 0x3d5   : > { %v3466_v42 = vmul.f32 %v2923_v41, %v2919_v33 }
 0x3d7   : > { %2714 = vmatmul.mubr.msk.f32.vlgmr.msra.gmra.mrb[2].mxu1 %vm638_vm3, %v3466_v42 }
 0x3d8   : > { %v2925_v43 = vpop.eup %2924  ;;  %2722 = vmatpush3.xpose.msk.msra.mxu1 %vm638_vm3, %v973_v37  ;;  %2723 = vmatprep.mubr.msk.f32.mxu1 %vm3143_vm1, %v3142_v3 }
 0x3d9   : > { %v3473_v44 = vmul.f32 %v2925_v43, %v2921_v35  ;;  %2731 = vmatprep.subr.mxu1 %v3142_v3 }
 0x3db   : > { %2719 = vmatmul.mubr.msk.f32.vlgmr.msra.gmra.mrb[6].mxu0 %vm638_vm3, %v3473_v44  ;;  %2724 = vmatmul.mubr.msk.f32.vlgmr.msra.gmra.mrb[4].mxu1 %vm638_vm3, %v971_v45 }
 0x3dc   : > { %2727 = vmatpush3.xpose.msk.msra.mxu0 %vm638_vm3, %v1051_v38  ;;  %2728 = vmatprep.mubr.msk.f32.mxu0 %vm3143_vm1, %v3142_v3 }
 0x3dd   : > { %2736 = vmatprep.subr.mxu0 %v3142_v3  ;;  %2733 = vmatprep.mubr.msk.f32.mxu1 %vm3143_vm1, %v3142_v3 }
 0x3df   : > { %2729 = vmatmul.mubr.msk.f32.vlgmr.msra.gmra.mrb[8].mxu0 %vm638_vm3, %v1049_v46 }
 0x3e0   : > { %2738 = vmatprep.mubr.msk.f32.mxu0 %vm3143_vm1, %v3142_v3 }
 0x4aa   : > { %v888_v47 = vpop.f32.mrb[2].mxu1 }
 0x4ab   : > { %968 = vst.msk [vmem:[#allocation3] sm:$0xff] %vm638_vm3, %v888_v47  ;;  %v2715_v48 = vpop.f32.mrb[3].mxu1 }
 0x4ae   : > { %v964_v49 = vpop.f32.mrb[6].mxu0  ;;  %v1044_v50 = vpop.f32.mrb[4].mxu1 }
 0x4af   : > { %969 = vst.msk [vmem:[#allocation3 + $0x8] sm:$0xff] %vm638_vm3, %v964_v49  ;;  %v1126_v51 = vmul.f32 0.35355338, %v1044_v50  ;;  %v2720_v52 = vpop.f32.mrb[7].mxu0  ;;  %v2725_v53 = vpop.f32.mrb[5].mxu1 }
 0x4b1   : > { %v1128_v54 = vsel %vm638_vm3, %v1126_v51, -inf }
 0x4b2   : > { %1129 = vmax.xlane.f32.xlu1 %v1128_v54  ;;  %v1122_v55 = vpop.f32.mrb[8].mxu0 }
 0x4b3   : > { %v1127_v56 = vmul.f32 0.35355338, %v1122_v55  ;;  %v2730_v57 = vpop.f32.mrb[9].mxu0 }
 0x4b5   : > { %v1131_v58 = vsel %vm638_vm3, %v1127_v56, -inf }
 0x4b6   : > { %1132 = vmax.xlane.f32.xlu0 %v1131_v58 }
 0x4c3   : > { %1152 = vrot.lane.b32.xlu1 %v3436_v10, %s3148_s29 }
 0x4c7   : > { %1317 = vrot.lane.b32.xlu1 %v3436_v10, %s3149_s16 }
 0x4cb   : > { %1395 = vrot.lane.b32.xlu1 %v3439_v14, %s3149_s16 }
 0x4cc   : > { %1228 = vrot.lane.b32.xlu0 %v3439_v14, %s3148_s29 }
 0x4d0   : > { %1315 = vrot.lane.b32.xlu0 %v3436_v10, %s3150_s27 }
 0x53f   : > { %v1130_v59 = vpop.xlane.xlu1 %1129 }
 0x540   : > { %v1134_v60 = vsub.f32 %v1126_v51, %v1130_v59 }
 0x542   : > { %v1136_v61 = vmul.f32 1.442695, %v1134_v60 }
 0x543   : > { %v1153_v62 = vpop.permute.xlu1 %1152  ;;  %v1133_v63 = vpop.xlane.xlu0 %1132 }
 0x544   : > { %2926 = vpow2.f32 %v1136_v61  ;;  %v1135_v0 = vsub.f32 %v1127_v56, %v1133_v63  ;;  %2732 = vmatpush3.msra.mxu1 %v1153_v62 }
 0x545   : > { %2741 = vmatprep.subr.mxu1 %v3142_v3 }
 0x546   : > { %v1138_v1 = vmul.f32 1.442695, %v1135_v0 }
 0x547   : > { %v1229_v2 = vpop.permute.xlu0 %1228  ;;  %v1318_v11 = vpop.permute.xlu1 %1317 }
 0x548   : > { %2928 = vpow2.f32 %v1138_v1  ;;  %2737 = vmatpush3.msra.mxu0 %v1229_v2 }
 0x549   : > { %2746 = vmatprep.subr.mxu0 %v3142_v3 }
 0x54b   : > { %v1396_v12 = vpop.permute.xlu1 %1395  ;;  %v1316_v20 = vpop.permute.xlu0 %1315 }
 0x54e   : > { %v2927_v4 = vpop.eup %2926 }
 0x54f   : > { %v1140_v7 = vsel %vm638_vm3, %v2927_v4, 0.0 }
 0x550   : > { %1141 = vadd.xlane.f32.xlu1 %v1140_v7 }
 0x552   : > { %v2929_v8 = vpop.eup %2928 }
 0x553   : > { %v1143_v9 = vsel %vm638_vm3, %v2929_v8, 0.0 }
 0x554   : > { %1144 = vadd.xlane.f32.xlu1 %v1143_v9 }
 0x565   : > { %1393 = vrot.lane.b32.xlu1 %v3439_v14, %s3150_s27 }
 0x5dd   : > { %v1142_v13 = vpop.xlane.xlu1 %1141 }
 0x5de   : > { %2930 = vrcp.f32 %v1142_v13 }
 0x5e1   : > { %v1145_v15 = vpop.xlane.xlu1 %1144 }
 0x5e2   : > { %2932 = vrcp.f32 %v1145_v15 }
 0x5e5   : > { %v1394_v21 = vpop.permute.xlu1 %1393 }
 0x5e8   : > { %v2931_v16 = vpop.eup %2930 }
 0x5e9   : > { %v3502_v17 = vmul.f32 %v2931_v16, %v2927_v4 }
 0x5eb   : > { %2734 = vmatmul.mubr.msk.f32.vlgmr.msra.gmra.mrb[6].mxu1 %vm638_vm3, %v3502_v17  ;;  %v1150_v52 = vadd.f32 %v3502_v17, %v3466_v42 }
 0x5ec   : > { %v2933_v18 = vpop.eup %2932  ;;  %2742 = vmatpush3.xpose.msk.msra.mxu1 %vm638_vm3, %v1318_v11  ;;  %2743 = vmatprep.mubr.msk.f32.mxu1 %vm3143_vm1, %v3142_v3 }
 0x5ed   : > { %v3509_v19 = vmul.f32 %v2933_v18, %v2929_v8  ;;  %2751 = vmatprep.subr.mxu1 %v3142_v3 }
 0x5ef   : > { %2739 = vmatmul.mubr.msk.f32.vlgmr.msra.gmra.mrb[10].mxu0 %vm638_vm3, %v3509_v19  ;;  %2744 = vmatmul.mubr.msk.f32.vlgmr.msra.gmra.mrb[8].mxu1 %vm638_vm3, %v1316_v20  ;;  %v1151_v57 = vadd.f32 %v3509_v19, %v3473_v44 }
 0x5f0   : > { %2747 = vmatpush3.xpose.msk.msra.mxu0 %vm638_vm3, %v1396_v12  ;;  %2748 = vmatprep.mubr.msk.f32.mxu0 %vm3143_vm1, %v3142_v3 }
 0x5f1   : > { %2756 = vmatprep.subr.mxu0 %v3142_v3  ;;  %2753 = vmatprep.mubr.msk.f32.mxu1 %vm3143_vm1, %v3142_v3 }
 0x5f3   : > { %2749 = vmatmul.mubr.msk.f32.vlgmr.msra.gmra.mrb[12].mxu0 %vm638_vm3, %v1394_v21 }
 0x5f4   : > { %2758 = vmatprep.mubr.msk.f32.mxu0 %vm3143_vm1, %v3142_v3 }
 0x6be   : > { %v3524_v22 = vpop.f32.mrb[6].mxu1 }
 0x6bf   : > { %v2735_v23 = vpop.f32.mrb[7].mxu1 }
 0x6c2   : > { %v3526_v24 = vpop.f32.mrb[10].mxu0  ;;  %v1389_v25 = vpop.f32.mrb[8].mxu1 }
 0x6c3   : > { %v1471_v26 = vmul.f32 0.35355338, %v1389_v25  ;;  %v2740_v27 = vpop.f32.mrb[11].mxu0  ;;  %v2745_v28 = vpop.f32.mrb[9].mxu1 }
 0x6c5   : > { %v1473_v29 = vsel %vm638_vm3, %v1471_v26, -inf }
 0x6c6   : > { %1474 = vmax.xlane.f32.xlu0 %v1473_v29  ;;  %v1467_v30 = vpop.f32.mrb[12].mxu0 }
 0x6c7   : > { %v1472_v31 = vmul.f32 0.35355338, %v1467_v30  ;;  %v2750_v32 = vpop.f32.mrb[13].mxu0 }
 0x6c9   : > { %v1476_v33 = vsel %vm638_vm3, %v1472_v31, -inf }
 0x6ca   : > { %1477 = vmax.xlane.f32.xlu1 %v1476_v33 }
 0x6db   : > { %1497 = vrot.lane.b32.xlu1 %v3436_v10, %s3151_s21 }
 0x6dc   : > { %1573 = vrot.lane.b32.xlu0 %v3439_v14, %s3151_s21 }
 0x6df   : > { %1662 = vrot.lane.b32.xlu1 %v3436_v10, %s3152_s11 }
 0x6e3   : > { %1740 = vrot.lane.b32.xlu1 %v3439_v14, %s3152_s11 }
 0x6e7   : > { %1738 = vrot.lane.b32.xlu1 %v3439_v14, %s3153_s13 }
 0x753   : > { %v1475_v34 = vpop.xlane.xlu0 %1474 }
 0x754   : > { %v1479_v35 = vsub.f32 %v1471_v26, %v1475_v34 }
 0x756   : > { %v1481_v36 = vmul.f32 1.442695, %v1479_v35 }
 0x757   : > { %v1574_v37 = vpop.permute.xlu0 %1573  ;;  %v1478_v38 = vpop.xlane.xlu1 %1477 }
 0x758   : > { %2934 = vpow2.f32 %v1481_v36  ;;  %v1480_v39 = vsub.f32 %v1472_v31, %v1478_v38  ;;  %2757 = vmatpush3.msra.mxu0 %v1574_v37  ;;  %v2910_v37 = vld [vmem:[%s3392_s15] sm:$0xff]   ;;  %v2911_v38 = vld [vmem:[%s3392_s15 + $0x8] sm:$0xff]  }
 0x759   : > { %2766 = vmatprep.subr.mxu0 %v3142_v3 }
 0x75a   : > { %v1483_v40 = vmul.f32 1.442695, %v1480_v39 }
 0x75b   : > { %v1498_v41 = vpop.permute.xlu1 %1497 }
 0x75c   : > { %2936 = vpow2.f32 %v1483_v40  ;;  %2752 = vmatpush3.msra.mxu1 %v1498_v41 }
 0x75d   : > { %2761 = vmatprep.subr.mxu1 %v3142_v3 }
 0x75f   : > { %v1663_v50 = vpop.permute.xlu1 %1662 }
 0x762   : > { %v2935_v43 = vpop.eup %2934 }
 0x763   : > { %v1485_v45 = vsel %vm638_vm3, %v2935_v43, 0.0  ;;  %v1741_v56 = vpop.permute.xlu1 %1740 }
 0x764   : > { %1486 = vadd.xlane.f32.xlu0 %v1485_v45 }
 0x766   : > { %v2937_v46 = vpop.eup %2936 }
 0x767   : > { %v1488_v47 = vsel %vm638_vm3, %v2937_v46, 0.0  ;;  %v1739_v44 = vpop.permute.xlu1 %1738 }
 0x768   : > { %1489 = vadd.xlane.f32.xlu0 %v1488_v47 }
 0x77e   : > { %1660 = vrot.lane.b32.xlu0 %v3436_v10, %s3153_s13 }
 0x7f1   : > { %v1487_v48 = vpop.xlane.xlu0 %1486 }
 0x7f2   : > { %2938 = vrcp.f32 %v1487_v48 }
 0x7f5   : > { %v1490_v49 = vpop.xlane.xlu0 %1489 }
 0x7f6   : > { %2940 = vrcp.f32 %v1490_v49 }
 0x7f9   : > { %v1661_v59 = vpop.permute.xlu0 %1660 }
 0x7fc   : > { %v2939_v51 = vpop.eup %2938 }
 0x7fd   : > { %v1493_v53 = vmul.f32 %v2939_v51, %v2935_v43 }
 0x7ff   : > { %v3542_v54 = vadd.f32 %v1493_v53, %v1150_v52  ;;  %2754 = vmatmul.mubr.msk.f32.vlgmr.msra.gmra.mrb[10].mxu1 %vm638_vm3, %v1493_v53  ;;  %v3603_v53 = vld [vmem:[%s3409_s12] sm:$0xff] }
 0x800   : > { %v2941_v55 = vpop.eup %2940  ;;  %2762 = vmatpush3.xpose.msk.msra.mxu1 %vm638_vm3, %v1663_v50  ;;  %2763 = vmatprep.mubr.msk.f32.mxu1 %vm3143_vm1, %v3142_v3  ;;  %v2017_v50 = vlaneseq }
 0x801   : > { %v1494_v58 = vmul.f32 %v2941_v55, %v2937_v46  ;;  %2771 = vmatprep.subr.mxu1 %v3142_v3 }
 0x802   : > { %v3599_v51 = vshrl.u32 %v2017_v50, 7 }
 0x803   : > { %v3551_v42 = vadd.f32 %v1494_v58, %v1151_v57  ;;  %2759 = vmatmul.mubr.msk.f32.vlgmr.msra.gmra.mrb[14].mxu0 %vm638_vm3, %v1494_v58  ;;  %2764 = vmatmul.mubr.msk.f32.vlgmr.msra.gmra.mrb[12].mxu1 %vm638_vm3, %v1661_v59 }
 0x804   : > { %2767 = vmatpush3.xpose.msk.msra.mxu0 %vm638_vm3, %v1741_v56  ;;  %2768 = vmatprep.mubr.msk.f32.mxu0 %vm3143_vm1, %v3142_v3  ;;  %v2019_v52 = vsub.s32 0, %v3599_v51 }
 0x805   : > { %2776 = vmatprep.subr.mxu0 %v3142_v3  ;;  %2773 = vmatprep.mubr.msk.f32.mxu1 %vm3143_vm1, %v3142_v3 }
 0x807   : > { %2769 = vmatmul.mubr.msk.f32.vlgmr.msra.gmra.mrb[16].mxu0 %vm638_vm3, %v1739_v44 }
 0x808   : > { %2778 = vmatprep.mubr.msk.f32.mxu0 %vm3143_vm1, %v3142_v3 }
 0x8d2   : > { %v1569_v60 = vpop.f32.mrb[10].mxu1 }
 0x8d3   : > { %v2755_v61 = vpop.f32.mrb[11].mxu1 }
 0x8d6   : > { %v1645_v62 = vpop.f32.mrb[14].mxu0  ;;  %v1734_v63 = vpop.f32.mrb[12].mxu1 }
 0x8d7   : > { %v1816_v0 = vmul.f32 0.35355338, %v1734_v63  ;;  %v2760_v1 = vpop.f32.mrb[15].mxu0  ;;  %v2765_v2 = vpop.f32.mrb[13].mxu1 }
 0x8d9   : > { %v1818_v4 = vsel %vm638_vm3, %v1816_v0, -inf }
 0x8da   : > { %1819 = vmax.xlane.f32.xlu0 %v1818_v4  ;;  %v1812_v7 = vpop.f32.mrb[16].mxu0 }
 0x8db   : > { %v1817_v8 = vmul.f32 0.35355338, %v1812_v7  ;;  %v2770_v9 = vpop.f32.mrb[17].mxu0 }
 0x8dd   : > { %v1821_v11 = vsel %vm638_vm3, %v1817_v8, -inf }
 0x8de   : > { %1822 = vmax.xlane.f32.xlu1 %v1821_v11  ;;  %v2912_v11 = vld [vmem:[%s3397_s30] sm:$0xff]  }
 0x8ef   : > { %1842 = vrot.lane.b32.xlu1 %v3436_v10, %s3154_s5 }
 0x8f3   : > { %1306 = vrot.lane.b32.xlu1 %v3524_v22, %s3155_s18 }
 0x8f7   : > { %1308 = vrot.lane.b32.xlu1 %v3526_v24, %s3155_s18 }
 0x8fb   : > { %1653 = vrot.lane.b32.xlu1 %v1645_v62, %s3156_s19 }
 0x967   : > { %v1820_v12 = vpop.xlane.xlu0 %1819 }
 0x968   : > { %v1824_v13 = vsub.f32 %v1816_v0, %v1820_v12  ;;  %v2913_v12 = vld [vmem:[%s3397_s30 + $0x8] sm:$0xff]   ;;  %s3790_s30 = scalar_lea.vmem [#allocation7], %s3368_s14 }
 0x96a   : > { %v1826_v15 = vmul.f32 1.442695, %v1824_v13  ;;  %v2914_v13 = vld [vmem:[%s3403_s17] sm:$0xff]  }
 0x96b   : > { %v1823_v16 = vpop.xlane.xlu1 %1822 }
 0x96c   : > { %2942 = vpow2.f32 %v1826_v15  ;;  %v1825_v17 = vsub.f32 %v1817_v8, %v1823_v16  ;;  %v2915_v15 = vld [vmem:[%s3403_s17 + $0x8] sm:$0xff]  }
 0x96e   : > { %v1828_v18 = vmul.f32 1.442695, %v1825_v17 }
 0x96f   : > { %v1843_v19 = vpop.permute.xlu1 %1842 }
 0x970   : > { %2944 = vpow2.f32 %v1828_v18  ;;  %2772 = vmatpush3.msra.mxu1 %v1843_v19 }
 0x971   : > { %2781 = vmatprep.subr.bf16.mxu1 %v3142_v3 }
 0x973   : > { %v1307_v10 = vpop.permute.xlu1 %1306 }
 0x974   : > { %1313 = vst.msk [vmem:[#allocation3] sm:$0xff] %vm1312_vm4, %v1307_v10 }
 0x976   : > { %v2943_v20 = vpop.eup %2942 }
 0x977   : > { %v1309_v21 = vpop.permute.xlu1 %1308  ;;  %v1830_v22 = vsel %vm638_vm3, %v2943_v20, 0.0 }
 0x978   : > { %1314 = vst.msk [vmem:[#allocation3 + $0x8] sm:$0xff] %vm1312_vm4, %v1309_v21  ;;  %1831 = vadd.xlane.f32.xlu0 %v1830_v22  ;;  %v2108_v21 = vsub.s32 2, %v3599_v51 }
 0x97a   : > { %v2945_v23 = vpop.eup %2944 }
 0x97b   : > { %v1654_v24 = vpop.permute.xlu1 %1653  ;;  %v1833_v25 = vsel %vm638_vm3, %v2945_v23, 0.0 }
 0x97c   : > { %1659 = vst.msk [vmem:[#allocation3 + $0x8] sm:$0xff] %vm1657_vm5, %v1654_v24  ;;  %1834 = vadd.xlane.f32.xlu0 %v1833_v25  ;;  %v2114_v25 = vsub.s32 3, %v3599_v51 }
 0x992   : > { %1918 = vrot.lane.b32.xlu0 %v3439_v14, %s3154_s5 }
 0x996   : > { %1651 = vrot.lane.b32.xlu0 %v1569_v60, %s3156_s19 }
 0xa05   : > { %v1832_v26 = vpop.xlane.xlu0 %1831 }
 0xa06   : > { %2946 = vrcp.f32 %v1832_v26 }
 0xa09   : > { %v1835_v27 = vpop.xlane.xlu0 %1834 }
 0xa0a   : > { %2948 = vrcp.f32 %v1835_v27 }
 0xa0d   : > { %v1919_v28 = vpop.permute.xlu0 %1918 }
 0xa0e   : > { %2777 = vmatpush3.msra.mxu0 %v1919_v28 }
 0xa0f   : > { %2789 = vmatprep.subr.bf16.mxu0 %v3142_v3 }
 0xa10   : > { %v2947_v29 = vpop.eup %2946 }
 0xa11   : > { %v1838_v30 = vmul.f32 %v2947_v29, %v2943_v20  ;;  %v1652_v31 = vpop.permute.xlu0 %1651  ;;  %v2115_v29 = vrot.slane %v3603_v53, %v2114_v25 }
 0xa12   : > { %1658 = vst.msk [vmem:[#allocation3] sm:$0xff] %vm1657_vm5, %v1652_v31 }
 0xa13   : > { %v1840_v14 = vadd.f32 %v1838_v30, %v3542_v54  ;;  %2774 = vmatmul.mubr.msk.f32.vlgmr.msra.gmra.mrb[14].mxu1 %vm638_vm3, %v1838_v30  ;;  %v2020_v54 = vrot.slane %v3603_v53, %v2019_v52 }
 0xa14   : > { %v2949_v32 = vpop.eup %2948  ;;  %2785 = vmatprep.mubr.msk.bf16.mxu1 %vm3143_vm1, %v3142_v3  ;;  %2782 = vmatpush3.bf16.msra.mxu1 %v2910_v37 }
 0xa15   : > { %v2005_v33 = vmul.f32 0.25, %v1840_v14  ;;  %v1839_v34 = vmul.f32 %v2949_v32, %v2945_v23  ;;  %2783 = vmatprep.subr.bf16.mxu1 %v3142_v3  ;;  %v2109_v23 = vrot.slane %v3603_v53, %v2108_v21 }
 0xa17   : > { %2007 = vst.msk [vmem:[%s3411_s28] sm:$0xff] %vm638_vm3, %v2005_v33  ;;  %v1841_v35 = vadd.f32 %v1839_v34, %v3551_v42  ;;  %2779 = vmatmul.mubr.msk.f32.vlgmr.msra.gmra.mrb[18].mxu0 %vm638_vm3, %v1839_v34  ;;  %v2916_v33 = vld [vmem:[%s3403_s17 + $0x10] sm:$0xff]   ;;  %v2917_v34 = vld [vmem:[%s3403_s17 + $0x18] sm:$0xff]  }
 0xa18   : > { %2793 = vmatprep.mubr.msk.bf16.mxu0 %vm3143_vm1, %v3142_v3  ;;  %2784 = vmatpush3.bf16.msra.mxu1 %v2911_v38 }
 0xa19   : > { %v2006_v36 = vmul.f32 0.25, %v1841_v35  ;;  %2797 = vmatprep.subr.bf16.mxu1 %v3142_v3  ;;  %2790 = vmatpush3.bf16.msra.mxu0 %v2912_v11  ;;  %v2623_v35 = vld [vmem:[%s3790_s30] ss:$0 sm:$0xff] }
 0xa1a   : > { %2791 = vmatprep.subr.bf16.mxu0 %v3142_v3 }
 0xa1b   : > { %2008 = vst.msk [vmem:[%s3411_s28 + $0x8] sm:$0xff] %vm638_vm3, %v2006_v36 }
 0xa1d   : > { %2792 = vmatpush3.bf16.msra.mxu0 %v2913_v12  ;;  %v2300_v12 = vsub.s32 4, %v3599_v51 }
 0xae6   : > { %v1914_v39 = vpop.f32.mrb[14].mxu1 }
 0xae7   : > { %1996 = vrot.lane.b32.xlu0 %v1914_v39, %s3157_s22  ;;  %v2775_v40 = vpop.f32.mrb[15].mxu1 }
 0xaea   : > { %v1990_v41 = vpop.f32.mrb[18].mxu0 }
 0xaeb   : > { %1998 = vrot.lane.b32.xlu1 %v1990_v41, %s3157_s22  ;;  %v2780_v43 = vpop.f32.mrb[19].mxu0 }
 0xb59   : > { %v1997_v45 = vpop.permute.xlu0 %1996 }
 0xb5a   : > { %2003 = vst.msk [vmem:[#allocation3] sm:$0xff] %vm2002_vm6, %v1997_v45 }
 0xb5d   : > { %v1999_v46 = vpop.permute.xlu1 %1998 }
 0xb5e   : > { %2004 = vst.msk [vmem:[#allocation3 + $0x8] sm:$0xff] %vm2002_vm6, %v1999_v46 }
 0xb61   : > { %v2010_v47 = vld [vmem:[#allocation3] sm:$0xff] }
 0xb65   : > { %v2011_v48 = vld [vmem:[#allocation3 + $0x8] sm:$0xff] }
 0xb66   : > { %v2012_v49 = vpack.c.bf16 %v2011_v48, %v2010_v47  ;;  %v2199_v47 = vsub.s32 1, %v3599_v51 }
 0xb68   : > { %2786 = vmatmul.mubr.msk.bf16.vlgmr.msra.gmra.mrb[16].mxu1 %vm590_vm2, %v2012_v49  ;;  %v2200_v48 = vrot.slane %v3603_v53, %v2199_v47 }
 0xb69   : > { %2805 = vmatprep.mubr.msk.bf16.mxu1 %vm3143_vm1, %v3142_v3  ;;  %2798 = vmatpush3.bf16.msra.mxu1 %v2914_v13  ;;  %v2306_v13 = vsub.s32 5, %v3599_v51 }
 0xb6a   : > { %2799 = vmatprep.subr.bf16.mxu1 %v3142_v3 }
 0xb6d   : > { %2800 = vmatpush3.bf16.msra.mxu1 %v2915_v15  ;;  %v2301_v15 = vrot.slane %v3603_v53, %v2300_v12 }
 0xb6e   : > { %2801 = vmatprep.subr.bf16.mxu1 %v3142_v3 }
 0xb71   : > { %2802 = vmatpush3.bf16.msra.mxu1 %v2916_v33 }
 0xb72   : > { %2803 = vmatprep.subr.bf16.mxu1 %v3142_v3 }
 0xb75   : > { %2804 = vmatpush3.bf16.msra.mxu1 %v2917_v34 }
 0xc3b   : > { %v2070_v55 = vpop.f32.mrb[16].mxu1 }
 0xc3c   : > { %v2071_v56 = vadd.f32 %v2070_v55, %v2020_v54  ;;  %v2787_v57 = vpop.f32.mrb[17].mxu1 }
 0xc3d   : > { %v2073_v58 = vpop.f32.mrb[18].mxu1 }
 0xc3e   : > { %v2074_v59 = vadd.f32 %v2073_v58, %v2020_v54  ;;  %v2788_v42 = vpop.f32.mrb[19].mxu1  ;;  %v2077_v44 = vadd.f32 %v2071_v56, %v3418_v5 }
 0xc40   : > { %v2079_v60 = vsel %vm590_vm2, %v2077_v44, 0.0  ;;  %v2078_v61 = vadd.f32 %v2074_v59, %v3420_v6 }
 0xc41   : > { %2080 = vadd.xlane.f32.xlu0 %v2079_v60 }
 0xc42   : > { %v2082_v62 = vsel %vm590_vm2, %v2078_v61, 0.0 }
 0xc43   : > { %2083 = vadd.xlane.f32.xlu1 %v2082_v62 }
 0xcce   : > { %v2081_v63 = vpop.xlane.xlu0 %2080 }
 0xccf   : > { %v2086_v0 = vmul.f32 0.03125, %v2081_v63 }
 0xcd0   : > { %v2084_v1 = vpop.xlane.xlu1 %2083 }
 0xcd1   : > { %v2088_v2 = vsub.f32 %v2077_v44, %v2086_v0  ;;  %v2087_v4 = vmul.f32 0.03125, %v2084_v1 }
 0xcd3   : > { %v2089_v7 = vsub.f32 %v2078_v61, %v2087_v4  ;;  %v2090_v8 = vmul.f32 %v2088_v2, %v2088_v2 }
 0xcd5   : > { %v2092_v5 = vsel %vm590_vm2, %v2090_v8, 0.0  ;;  %v2091_v9 = vmul.f32 %v2089_v7, %v2089_v7 }
 0xcd6   : > { %2093 = vadd.xlane.f32.xlu0 %v2092_v5 }
 0xcd7   : > { %v2095_v6 = vsel %vm590_vm2, %v2091_v9, 0.0 }
 0xcda   : > { %2096 = vadd.xlane.f32.xlu0 %v2095_v6 }
 0xd63   : > { %v2094_v16 = vpop.xlane.xlu0 %2093 }
 0xd64   : > { %v2098_v17 = vmul.f32 0.03125, %v2094_v16 }
 0xd66   : > { %v2100_v18 = vadd.f32 1e-05, %v2098_v17  ;;  %v2307_v17 = vrot.slane %v3603_v53, %v2306_v13 }
 0xd67   : > { %v2097_v19 = vpop.xlane.xlu0 %2096 }
 0xd68   : > { %2950 = vrsqrt.f32 %v2100_v18  ;;  %v2099_v10 = vmul.f32 0.03125, %v2097_v19 }
 0xd6a   : > { %v2101_v20 = vadd.f32 1e-05, %v2099_v10 }
 0xd6c   : > { %2952 = vrsqrt.f32 %v2101_v20 }
 0xd72   : > { %v2951_v22 = vpop.eup %2950 }
 0xd73   : > { %v2104_v24 = vmul.f32 %v2951_v22, %v2088_v2 }
 0xd75   : > { %v2110_v27 = vmul.f32 %v2109_v23, %v2104_v24 }
 0xd76   : > { %v2953_v26 = vpop.eup %2952 }
 0xd77   : > { %v2105_v28 = vmul.f32 %v2953_v26, %v2089_v7  ;;  %v2116_v31 = vadd.f32 %v2115_v29, %v2110_v27 }
 0xd79   : > { %v2111_v30 = vmul.f32 %v2109_v23, %v2105_v28 }
 0xd7b   : > { %v2117_v14 = vadd.f32 %v2115_v29, %v2111_v30 }
 0xd7d   : > { %v2118_v32 = vpack.c.bf16 %v2117_v14, %v2116_v31 }
 0xd7f   : > { %2794 = vmatmul.mubr.msk.bf16.vlgmr.msra.gmra.mrb[20].mxu0 %vm590_vm2, %v2118_v32 }
 0xe52   : > { %v2179_v36 = vpop.f32.mrb[20].mxu0 }
 0xe53   : > { %v2180_v37 = vadd.f32 %v2623_v35, %v2179_v36  ;;  %v2795_v38 = vpop.f32.mrb[21].mxu0 }
 0xe54   : > { %v2182_v39 = vpop.f32.mrb[22].mxu0 }
 0xe55   : > { %v2183_v40 = vadd.f32 %v2623_v35, %v2182_v39  ;;  %v2796_v41 = vpop.f32.mrb[23].mxu0  ;;  %v2186_v43 = vmax.f32 %v2180_v37, 0.0 }
 0xe57   : > { %v2187_v45 = vmax.f32 %v2183_v40, 0.0  ;;  %v2633_v40 = vld [vmem:[%s3746_s8] ss:$0 sm:$0xff] (!%p2632_p10) }
 0xe59   : > { %v2188_v46 = vpack.c.bf16 %v2187_v45, %v2186_v43  ;;  %v2634_v43 = vld [vmem:[%s3747_s9] ss:$0 sm:$0xff] (!%p2632_p10) }
 0xe5b   : > { %2806 = vmatmul.mubr.msk.bf16.vlgmr.msra.gmra.mrb[20].mxu1 %vm2225_vm7, %v2188_v46 }
 0xf2e   : > { %v2263_v3 = vpop.f32.mrb[20].mxu1 }
 0xf2f   : > { %v2264_v49 = vadd.f32 %v2263_v3, %v2200_v48  ;;  %v2807_v50 = vpop.f32.mrb[21].mxu1 }
 0xf30   : > { %v2266_v52 = vpop.f32.mrb[22].mxu1 }
 0xf31   : > { %v2267_v54 = vadd.f32 %v2266_v52, %v2200_v48  ;;  %v2808_v55 = vpop.f32.mrb[23].mxu1  ;;  %v2270_v56 = vadd.f32 %v2264_v49, %v2116_v31 }
 0xf33   : > { %v2272_v57 = vsel %vm590_vm2, %v2270_v56, 0.0  ;;  %v2271_v58 = vadd.f32 %v2267_v54, %v2117_v14 }
 0xf34   : > { %2273 = vadd.xlane.f32.xlu1 %v2272_v57 }
 0xf35   : > { %v2275_v59 = vsel %vm590_vm2, %v2271_v58, 0.0 }
 0xf36   : > { %2276 = vadd.xlane.f32.xlu0 %v2275_v59 }
 0xfc1   : > { %v2274_v42 = vpop.xlane.xlu1 %2273 }
 0xfc2   : > { %v2278_v44 = vmul.f32 0.03125, %v2274_v42 }
 0xfc3   : > { %v2277_v60 = vpop.xlane.xlu0 %2276 }
 0xfc4   : > { %v2280_v61 = vsub.f32 %v2270_v56, %v2278_v44  ;;  %v2279_v62 = vmul.f32 0.03125, %v2277_v60 }
 0xfc6   : > { %v2281_v63 = vsub.f32 %v2271_v58, %v2279_v62  ;;  %v2282_v0 = vmul.f32 %v2280_v61, %v2280_v61 }
 0xfc8   : > { %v2284_v1 = vsel %vm590_vm2, %v2282_v0, 0.0  ;;  %v2283_v2 = vmul.f32 %v2281_v63, %v2281_v63 }
 0xfc9   : > { %2285 = vadd.xlane.f32.xlu1 %v2284_v1 }
 0xfca   : > { %v2287_v4 = vsel %vm590_vm2, %v2283_v2, 0.0 }
 0xfcb   : > { %2288 = vadd.xlane.f32.xlu0 %v2287_v4 }
0x1056   : > { %v2286_v7 = vpop.xlane.xlu1 %2285 }
0x1057   : > { %v2290_v8 = vmul.f32 0.03125, %v2286_v7 }
0x1058   : > { %v2289_v5 = vpop.xlane.xlu0 %2288 }
0x1059   : > { %v2292_v9 = vadd.f32 1e-05, %v2290_v8  ;;  %v2291_v6 = vmul.f32 0.03125, %v2289_v5 }
0x105b   : > { %2954 = vrsqrt.f32 %v2292_v9  ;;  %v2293_v11 = vadd.f32 1e-05, %v2291_v6 }
0x105d   : > { %2956 = vrsqrt.f32 %v2293_v11 }
0x1065   : > { %v2955_v16 = vpop.eup %2954 }
0x1066   : > { %v2296_v18 = vmul.f32 %v2955_v16, %v2280_v61 }
0x1067   : > { %v2957_v19 = vpop.eup %2956 }
0x1068   : > { %v2302_v10 = vmul.f32 %v2301_v15, %v2296_v18  ;;  %v2297_v20 = vmul.f32 %v2957_v19, %v2281_v63  ;;  %2315 = sbr.rel (%p2632_p10) target bundleno = 4522 (0x11aa), region = 76 }
0x106a   : > { %v2308_v21 = vadd.f32 %v2307_v17, %v2302_v10  ;;  %v2303_v22 = vmul.f32 %v2301_v15, %v2297_v20 }
0x106c   : > { %2310 = vst.msk [vmem:[#allocation2] sm:$0xff] %vm590_vm2, %v2308_v21  ;;  %v2309_v23 = vadd.f32 %v2307_v17, %v2303_v22  ;;  %v2318_v51 = vsel (!%p2632_p10), %vm590_vm2, %v2308_v21, 0.0 }
0x106d   : > { %2319 = vadd.xlane.f32.xlu0 (!%p2632_p10), %v2318_v51 }
0x106e   : > { %2311 = vst.msk [vmem:[#allocation2 + $0x8] sm:$0xff] %vm590_vm2, %v2309_v23  ;;  %v2321_v24 = vsel (!%p2632_p10), %vm590_vm2, %v2309_v23, 0.0 }
0x1071   : > { %2322 = vadd.xlane.f32.xlu0 %v2321_v24 }
0x10fa   : > { %v2320_v53 = vpop.xlane.xlu0 %2319 }
0x10fb   : > { %v2324_v25 = vmul.f32 0.03125, %v2320_v53 }
0x10fd   : > { %v2326_v26 = vsub.f32 %v2308_v21, %v2324_v25 }
0x10fe   : > { %v2323_v27 = vpop.xlane.xlu0 %2322 }
0x10ff   : > { %v2325_v28 = vmul.f32 0.03125, %v2323_v27  ;;  %v2328_v29 = vmul.f32 %v2326_v26, %v2326_v26 }
0x1101   : > { %v2327_v30 = vsub.f32 %v2309_v23, %v2325_v28  ;;  %v2330_v31 = vsel %vm590_vm2, %v2328_v29, 0.0 }
0x1102   : > { %2331 = vadd.xlane.f32.xlu1 %v2330_v31 }
0x1103   : > { %v2329_v14 = vmul.f32 %v2327_v30, %v2327_v30 }
0x1105   : > { %v2333_v32 = vsel %vm590_vm2, %v2329_v14, 0.0 }
0x1106   : > { %2334 = vadd.xlane.f32.xlu1 %v2333_v32 }
0x118f   : > { %v2332_v33 = vpop.xlane.xlu1 %2331 }
0x1190   : > { %v2336_v34 = vmul.f32 0.03125, %v2332_v33 }
0x1192   : > { %v2338_v35 = vadd.f32 1e-05, %v2336_v34 }
0x1193   : > { %v2335_v36 = vpop.xlane.xlu1 %2334 }
0x1194   : > { %2958 = vrsqrt.f32 %v2338_v35  ;;  %v2337_v37 = vmul.f32 0.03125, %v2335_v36 }
0x1196   : > { %v2339_v38 = vadd.f32 1e-05, %v2337_v37 }
0x1198   : > { %2960 = vrsqrt.f32 %v2339_v38 }
0x119e   : > { %v2959_v39 = vpop.eup %2958 }
0x119f   : > { %v2342_v41 = vmul.f32 %v2959_v39, %v2326_v26 }
0x11a1   : > { %v2350_v45 = vmul.f32 %v2633_v40, %v2342_v41 }
0x11a2   : > { %v2961_v46 = vpop.eup %2960 }
0x11a3   : > { %v2358_v47 = vadd.f32 %v2634_v43, %v2350_v45  ;;  %v2343_v48 = vmul.f32 %v2961_v46, %v2327_v30 }
0x11a5   : > { %2360 = vst.msk [vmem:[#allocation9] sm:$0xff] %vm590_vm2, %v2358_v47  ;;  %v2351_v3 = vmul.f32 %v2633_v40, %v2343_v48 }
0x11a7   : > { %v2359_v49 = vadd.f32 %v2634_v43, %v2351_v3 }
0x11a9   : > { %2361 = vst.msk [vmem:[#allocation9 + $0x8] sm:$0xff] %vm590_vm2, %v2359_v49 }
0x11aa PF: > { %s3158_s0 = smov [#allocation9]   ;;  %p3791_p13 = scmp.ne.s32.totalorder %s3773_s26, 0 }
0x11ab   : > { %s2376_s25 = sshll.u32 %s3158_s0, 4  ;;  %s2377_s25 = int_to_ptr.vmem [resolvable:$true] %s2376_s25 }
0x11ac   : > { %s3020_s29 = scalar_lea.vmem %s2377_s25, 256  ;;  %p3027_p9 = scmp.lt.s32.totalorder %s2377_s25, %s2377_s25 }
0x11ad   : > { %p3021_p12 = scmp.ne.s32.totalorder %s2377_s25, %s3020_s29  ;;  %p3028_p1 = scmp.lt.s32.totalorder %s3020_s29, %s3020_s29 }
0x11af   : > { %p3022_p0 = pnand %p3021_p12, %p3791_p13  ;;  %p3029_p2 = por %p3028_p1, %p3027_p9 }
0x11b1   : > { %p3023_p5 = pneg %p3022_p0 }
0x11b3   : > { %p3030_p7 = pnand %p3029_p2, %p3023_p5 }
0x11b5   : > { %3033 = shalt.err (!%p3030_p7)
}
0x11b6   : > { %s3034_s21 = scalar_lea.hbm %s3748_s10, 256 }
0x11b7   : > { %p3035_p3 = scmp.ne.s32.totalorder %s3748_s10, %s3034_s21  ;;  %p3040_p6 = scmp.lt.u32.totalorder %s3034_s21, %s3748_s10 }
0x11b9   : > { %p3036_p4 = pnand %p3035_p3, %p3791_p13 }
0x11bb   : > { %p3037_p11 = pneg %p3036_p4 }
0x11bd   : > { %p3042_p10 = pnand %p3040_p6, %p3037_p11 }
0x11bf   : > { %3045 = shalt.err (!%p3042_p10)
}
0x11c0   : > { %s3159_s22 = smov 128   ;;  %s2646_s17 = sshll.u32 %s3128_s20, 8 }
0x11c1   : > { %2816 = dma.vmem_to_hbm [thread:$0]  (%p3791_p13), %s2377_s25, 256, %s3748_s10, [#allocation6], %s3159_s22, %s3159_s22, %s3155_s18  }
0x11c2   : > { %s2394_s12 = sshll.u32 %s3411_s28, 4  ;;  %s3792_s29 = sld [smem:[#allocation26_spill]]  ;;  %s3682_s12 = int_to_ptr.vmem [resolvable:$true] %s2394_s12 }
0x11c3   : > { %s2363_s27 = scalar_lea.sflag [#allocation11], %s3368_s14  ;;  %s3046_s21 = scalar_lea.vmem %s3682_s12, 256 }
0x11c4   : > { %p3047_p12 = scmp.ne.s32.totalorder %s3682_s12, %s3046_s21  ;;  %s3160_s11 = smov [#allocation10]  }
0x11c5   : > { %s3050_s25 = sshll.u32 %s3160_s11, 4  ;;  %s3051_s25 = int_to_ptr.vmem [resolvable:$false] %s3050_s25 }
0x11c6   : > { %p3048_p0 = pnand %p3047_p12, %p3313_p8  ;;  %s3052_s20 = scalar_lea.vmem %s3051_s25, 512 }
0x11c7   : > { %p3053_p9 = scmp.lt.s32.totalorder %s3682_s12, %s3051_s25  ;;  %p3054_p1 = scmp.lt.s32.totalorder %s3052_s20, %s3046_s21 }
0x11c8   : > { %s3680_s16 = scalar_lea.hbm %s3792_s29, %s2646_s17  ;;  %p3049_p5 = pneg %p3048_p0 }
0x11c9   : > { %p3055_p2 = por %p3054_p1, %p3053_p9 }
0x11cb   : > { %p3056_p7 = pnand %p3055_p2, %p3049_p5 }
0x11cd   : > { %3059 = shalt.err (!%p3056_p7)
}
0x11ce   : > { %s3060_s28 = scalar_lea.hbm %s3680_s16, 256  ;;  %s3064_s19 = scalar_lea.hbm %s3792_s29, 512 }
0x11cf   : > { %p3061_p3 = scmp.ne.s32.totalorder %s3680_s16, %s3060_s28  ;;  %p3065_p6 = scmp.lt.u32.totalorder %s3680_s16, %s3792_s29 }
0x11d0   : > { %p3066_p10 = scmp.lt.u32.totalorder %s3064_s19, %s3060_s28  ;;  %p3068_p0 = scmp.lt.u32.totalorder %s3060_s28, %s3680_s16 }
0x11d1   : > { %p3062_p4 = pnand %p3061_p3, %p3313_p8 }
0x11d2   : > { %p3067_p12 = por %p3066_p10, %p3065_p6 }
0x11d3   : > { %p3063_p11 = pneg %p3062_p4 }
0x11d4   : > { %p3069_p5 = por %p3068_p0, %p3067_p12 }
0x11d6   : > { %p3070_p9 = pnand %p3069_p5, %p3063_p11 }
0x11d8   : > { %3073 = shalt.err (!%p3070_p9)
}
0x11d9   : > { %2817 = dma.vmem_to_hbm [thread:$0]  (%p3313_p8), %s3682_s12, 256, %s3680_s16, %s2363_s27, %s3159_s22, %s3159_s22, %s3155_s18  }
0x11da   : > { %3107 = dma.done.wait (%p3791_p13), [#allocation6], 256  }
0x11db   : > { %3109 = vsyncadd (%p3791_p13), [#allocation6], 4294967040 }
0x11dc PF: > { %s3793_s17 = sld [smem:[#allocation16_spill]]  ;;  %s3794_s24 = sld [smem:[#allocation21_spill]] }
0x11dd   : > { %s3795_s0 = sld [smem:[#allocation20_spill]] }
0x11e2   : > { %s2413_s21 = sand.u32 1, %s3793_s17   ;;  %p3796_p1 = scmp.ne.s32.totalorder %s3794_s24, 0 }
0x11e3   : > { %p3797_p2 = scmp.ge.s32.totalorder %s3795_s0, 2  ;;  %s2414_s23 = scalar_lea.sflag [#allocation11], %s2413_s21 }
0x11e5   : > { %p2830_p7 = pnand %p3797_p2, %p3796_p1 }
0x11e7   : > { %3111 = dma.done.wait (!%p2830_p7), %s2414_s23, 256  }
0x11e8   : > { %3113 = vsyncadd (!%p2830_p7), %s2414_s23, 4294967040  ;;  %s30_s22 = sadd.s32 1, %s3795_s0   ;;  %s3798_s17 = sld [smem:[#allocation17_spill]] }
0x11e9   : > { %p27_p3 = scmp.ge.s32.totalorder %s30_s22, 4   ;;  %s3799_s18 = sld [smem:[#allocation18_spill]] }
0x11ea   : > { %s3800_s19 = sld [smem:[#allocation23_spill]]  ;;  %s3801_s20 = sld [smem:[#allocation19_spill]] }
0x11eb   : > { %s3802_s21 = sld [smem:[#allocation22_spill]]  ;;  %29 = sbr.rel (!%p27_p3) target bundleno = 12 (0xc), region = 147 }
0x11f2   :  { %2419 = vsyncpa [#allocation5], 1 }
0x11f3   :  { %2421 = vsyncpa [#allocation5 + $0x1], 1 }
0x11f4   :  { %2422 = vsyncpa [#allocation8], 1 }
0x11f5   :  { %2424 = vsyncpa [#allocation8 + $0x1], 1 }
0x11f6   :  { %2425 = vsyncpa [#allocation6], 1 }
0x11f7   :  { %2427 = vsyncpa [#allocation6 + $0x1], 1 }
0x11f8   :  { %2428 = vsyncpa [#allocation11], 1 }
0x11f9   :  { %2430 = vsyncpa [#allocation11 + $0x1], 1 }

</bundles_post_ra>
